<compile_context>
chip_gen: v7x
topology: tpu7x:2x2x1
jax: 0.10.0
libtpu: 0.0.40
codegen_flags: <defaults>
</compile_context>

<pallas_src>
import jax
import jax.numpy as jnp
from jax import lax
from jax.experimental import pallas as pl
from jax.experimental.pallas import tpu as pltpu

VMEM_LIMIT = 48 * 1024 * 1024  # safe on every generation (well below v7x's 64 MiB)


def _round_up(x, m):
    return ((x + m - 1) // m) * m


def _pick_tile(n, target):
    """Largest multiple of 128 <= target that divides n (n is a multiple of 128)."""
    t = min(_round_up(target, 128), n)
    t = max(128, (t // 128) * 128)
    while n % t:
        t -= 128
    return t


# ---------------------------------------------------------------------------
# K1: one pass over (A + I):
#     * f32 degree accumulated across column tiles -> r = rsqrt(deg)
#     * bf16 copy of (A + I) written out (streamed to the propagation kernel)
# ---------------------------------------------------------------------------
def _deg_cast_kernel(a_ref, a_bf_ref, r_ref, acc_ref):
    k = pl.program_id(1)

    @pl.when(k == 0)
    def _():
        acc_ref[...] = jnp.zeros_like(acc_ref)

    a = a_ref[...]                                          # (TM, TK) f32
    acc_ref[...] += jnp.sum(a, axis=1, keepdims=True)       # f32 degree accumulation
    a_bf_ref[...] = a.astype(jnp.bfloat16)                  # bf16 copy of (A + I)

    @pl.when(k == pl.num_programs(1) - 1)
    def _():
        d = acc_ref[...]
        r_ref[...] = jnp.where(d > 0.0, lax.rsqrt(d), 0.0)  # guard padded rows


def degree_and_cast(a_pad):
    npad = a_pad.shape[0]
    tm = _pick_tile(npad, 256)
    tk = _pick_tile(npad, 512)
    return pl.pallas_call(
        _deg_cast_kernel,
        out_shape=(jax.ShapeDtypeStruct((npad, npad), jnp.bfloat16),
                   jax.ShapeDtypeStruct((npad, 1), jnp.float32)),
        grid=(npad // tm, npad // tk),
        in_specs=[pl.BlockSpec((tm, tk), lambda i, k: (i, k))],
        out_specs=(pl.BlockSpec((tm, tk), lambda i, k: (i, k)),
                   pl.BlockSpec((tm, 1), lambda i, k: (i, 0))),
        scratch_shapes=[pltpu.VMEM((tm, 1), jnp.float32)],
        compiler_params=pltpu.CompilerParams(
            dimension_semantics=("parallel", "arbitrary"),
            vmem_limit_bytes=VMEM_LIMIT),
    )(a_pad)


# ---------------------------------------------------------------------------
# K2 (per layer): XW_scaled = diag(r) @ (X @ W), bf16 output.
#     Tiny row-parallel kernel; folds the right half of the GCN normalization.
# ---------------------------------------------------------------------------
def _xw_kernel(x_ref, w_ref, r_ref, xw_ref):
    xw = jnp.dot(x_ref[...], w_ref[...], preferred_element_type=jnp.float32)
    xw_ref[...] = (r_ref[...] * xw).astype(jnp.bfloat16)


def xw_layer(x_bf16, w_bf16, r):
    npad, dpad = x_bf16.shape
    tm = _pick_tile(npad, 512)
    return pl.pallas_call(
        _xw_kernel,
        out_shape=jax.ShapeDtypeStruct((npad, dpad), jnp.bfloat16),
        grid=(npad // tm,),
        in_specs=[
            pl.BlockSpec((tm, dpad), lambda i: (i, 0)),      # X row tile (bf16)
            pl.BlockSpec((dpad, dpad), lambda i: (0, 0)),    # W (bf16)
            pl.BlockSpec((tm, 1), lambda i: (i, 0)),         # r row block (f32)
        ],
        out_specs=pl.BlockSpec((tm, dpad), lambda i: (i, 0)),
        compiler_params=pltpu.CompilerParams(
            dimension_semantics=("parallel",),
            vmem_limit_bytes=VMEM_LIMIT),
    )(x_bf16, w_bf16, r)


# ---------------------------------------------------------------------------
# K3 (per layer): y = tanh( diag(r) @ (A+I)_bf16 @ XW_scaled + b )
#     k-tiled contraction over the N axis, (tm, DP) f32 accumulator scratch,
#     row axis "parallel".  Emits both f32 (for xs) and bf16 (for next layer /
#     decode) copies of y.
# ---------------------------------------------------------------------------
def _prop_kernel(a_ref, xw_ref, r_ref, b_ref, y_ref, ybf_ref, acc_ref):
    k = pl.program_id(1)

    @pl.when(k == 0)
    def _():
        acc_ref[...] = jnp.zeros_like(acc_ref)

    acc_ref[...] += jnp.dot(a_ref[...], xw_ref[...],
                            preferred_element_type=jnp.float32)

    @pl.when(k == pl.num_programs(1) - 1)
    def _():
        y = jnp.tanh(r_ref[...] * acc_ref[...] + b_ref[...])   # f32
        y_ref[...] = y
        ybf_ref[...] = y.astype(jnp.bfloat16)


def propagate(a_bf16, xw_scaled, r, b):
    npad = a_bf16.shape[0]
    dpad = xw_scaled.shape[1]
    tm = _pick_tile(npad, 256)
    tk = _pick_tile(npad, 512)
    return pl.pallas_call(
        _prop_kernel,
        out_shape=(jax.ShapeDtypeStruct((npad, dpad), jnp.float32),
                   jax.ShapeDtypeStruct((npad, dpad), jnp.bfloat16)),
        grid=(npad // tm, npad // tk),
        in_specs=[
            pl.BlockSpec((tm, tk), lambda i, k: (i, k)),     # (A+I) tile (bf16)
            pl.BlockSpec((tk, dpad), lambda i, k: (k, 0)),   # scaled XW slice (bf16)
            pl.BlockSpec((tm, 1), lambda i, k: (i, 0)),      # r row block (f32)
            pl.BlockSpec((1, dpad), lambda i, k: (0, 0)),    # bias (f32)
        ],
        out_specs=(pl.BlockSpec((tm, dpad), lambda i, k: (i, 0)),
                   pl.BlockSpec((tm, dpad), lambda i, k: (i, 0))),
        scratch_shapes=[pltpu.VMEM((tm, dpad), jnp.float32)],
        compiler_params=pltpu.CompilerParams(
            dimension_semantics=("parallel", "arbitrary"),
            vmem_limit_bytes=VMEM_LIMIT),
    )(a_bf16, xw_scaled, r, b)


# ---------------------------------------------------------------------------
# K4: proximity decode  sigmoid(X X^T) * block_diag_mask, (TM, TN)-tiled.
#     bf16 X row tiles + pre-transposed bf16 X^T column tiles; mask rebuilt
#     in-kernel from batch ids; fully-masked tiles skip the MXU/EUP work.
# ---------------------------------------------------------------------------
def _decode_kernel(xr_ref, xcT_ref, br_ref, bc_ref, o_ref):
    same = br_ref[...] == bc_ref[...]                        # (TM,1)==(1,TN)
    hit = jnp.max(same.astype(jnp.int32))                    # 1 iff tile touches diag

    @pl.when(hit == 1)
    def _():
        s = jnp.dot(xr_ref[...], xcT_ref[...],
                    preferred_element_type=jnp.float32)      # (TM, TN) f32
        o_ref[...] = jnp.where(same, jax.nn.sigmoid(s), 0.0)

    @pl.when(hit == 0)
    def _():
        o_ref[...] = jnp.zeros_like(o_ref)


def proximity_decode(x_bf16, xT_bf16, batch_row, batch_col):
    npad, dpad = x_bf16.shape
    tm = _pick_tile(npad, 512)
    tn = _pick_tile(npad, 1024)
    return pl.pallas_call(
        _decode_kernel,
        out_shape=jax.ShapeDtypeStruct((npad, npad), jnp.float32),
        grid=(npad // tm, npad // tn),
        in_specs=[
            pl.BlockSpec((tm, dpad), lambda i, j: (i, 0)),   # X row tile (bf16)
            pl.BlockSpec((dpad, tn), lambda i, j: (0, j)),   # X^T col tile (bf16)
            pl.BlockSpec((tm, 1), lambda i, j: (i, 0)),      # batch ids (rows)
            pl.BlockSpec((1, tn), lambda i, j: (0, j)),      # batch ids (cols)
        ],
        out_specs=pl.BlockSpec((tm, tn), lambda i, j: (i, j)),
        compiler_params=pltpu.CompilerParams(
            dimension_semantics=("parallel", "parallel"),
            vmem_limit_bytes=VMEM_LIMIT),
    )(x_bf16, xT_bf16, batch_row, batch_col)


# ---------------------------------------------------------------------------
# Decoder forward (mode='proximity', gnn='GCN')
# ---------------------------------------------------------------------------
@jax.jit
def decoder_forward(a_pad, knowledge_bf16, w_stack, b_stack, batch_row, batch_col):
    a_bf16, r = degree_and_cast(a_pad)           # bf16 (A+I), rsqrt-degree
    x = knowledge_bf16                           # bf16 (NP, DP)
    xs = []
    num_layers = w_stack.shape[0]
    for l in range(num_layers):                  # static Python layer loop
        xw = xw_layer(x, w_stack[l], r)          # diag(r) @ (X @ W_l), bf16
        y_f32, y_bf16 = propagate(a_bf16, xw, r, b_stack[l])
        xs.append(y_f32)
        x = y_bf16
    xT = jnp.transpose(x)                        # glue: tiny (DP, NP) bf16 transpose
    out = proximity_decode(x, xT, batch_row, batch_col)
    return out, jnp.stack(xs, axis=0)


if __name__ == "__main__":
    # config consistent with Decoder(args, ...): hidden_dim=32, gnn_layers_num=2
    hidden_dim = 32
    gnn_layers_num = 2
    nodes_per_graph = 8
    num_graphs = 2
    N = nodes_per_graph * num_graphs                   # 16 nodes total

    # padded (lane-dense) sizes
    NP = max(128, _round_up(N, 128))
    DP = max(128, _round_up(hidden_dim, 128))

    key = jax.random.PRNGKey(0)
    k_feat, k_w = jax.random.split(key)

    # knowledge: node embeddings [N, hidden_dim], zero-padded to [NP, DP], bf16
    knowledge = jax.random.normal(k_feat, (N, hidden_dim), dtype=jnp.float32)
    knowledge_pad = jnp.zeros((NP, DP), jnp.float32).at[:N, :hidden_dim].set(knowledge)
    knowledge_bf16 = knowledge_pad.astype(jnp.bfloat16)

    # edge_index: a ring inside each graph (no cross-graph edges)
    src_list, dst_list = [], []
    for g in range(num_graphs):
        off = g * nodes_per_graph
        for i in range(nodes_per_graph):
            src_list.append(off + i)
            dst_list.append(off + (i + 1) % nodes_per_graph)
    src = jnp.array(src_list, dtype=jnp.int32)
    dst = jnp.array(dst_list, dtype=jnp.int32)

    # glue: dense (A + I) built at [N, N], then zero-padded to [NP, NP]
    a = jnp.zeros((N, N), jnp.float32)
    a = a.at[src, dst].set(1.0)
    a = a.at[dst, src].set(1.0)                        # undirected
    a = a + jnp.eye(N, dtype=jnp.float32)              # self loops
    a_pad = jnp.zeros((NP, NP), jnp.float32).at[:N, :N].set(a)

    # data.batch (graph id per node), padded with -1; mask built in-kernel
    batch = jnp.repeat(jnp.arange(num_graphs, dtype=jnp.int32), nodes_per_graph)
    batch_pad = jnp.full((NP,), -1, jnp.int32).at[:N].set(batch)
    batch_row = batch_pad.reshape(NP, 1)
    batch_col = batch_pad.reshape(1, NP)

    # deterministic GCN parameters (glorot-ish), stacked and zero-padded
    wkeys = jax.random.split(k_w, gnn_layers_num)
    w_stack = jnp.zeros((gnn_layers_num, DP, DP), jnp.float32)
    b_stack = jnp.zeros((gnn_layers_num, 1, DP), jnp.float32)
    for i in range(gnn_layers_num):
        w = jax.random.normal(wkeys[i], (hidden_dim, hidden_dim), jnp.float32)
        w = w * (1.0 / jnp.sqrt(jnp.float32(hidden_dim)))
        w_stack = w_stack.at[i, :hidden_dim, :hidden_dim].set(w)
    w_stack = w_stack.astype(jnp.bfloat16)             # MXU operands in bf16

    out_pad, xs_pad = decoder_forward(a_pad, knowledge_bf16, w_stack, b_stack,
                                      batch_row, batch_col)
    jax.block_until_ready(out_pad)
    jax.block_until_ready(xs_pad)

    # strip padding back to module shapes
    out = out_pad[:N, :N]
    xs_list = [xs_pad[l, :N, :hidden_dim] for l in range(gnn_layers_num)]

    assert out.shape == (N, N)
    assert all(t.shape == (N, hidden_dim) for t in xs_list)
    assert bool(jnp.all(jnp.isfinite(out)))
    assert all(bool(jnp.all(jnp.isfinite(t))) for t in xs_list)
    print("KERNEL_OK")
</pallas_src>

<mosaic_0001>
module attributes {stable_mosaic.version = 11 : i64} {
  func.func @_deg_cast_kernel(%arg0: i32, %arg1: i32, %arg2: memref<128x128xf32, #tpu.memory_space<vmem>>, %arg3: memref<128x128xbf16, #tpu.memory_space<vmem>>, %arg4: memref<128x1xf32, #tpu.memory_space<vmem>>, %arg5: memref<128x1xf32, #tpu.memory_space<vmem>>) attributes {dimension_semantics = [#tpu.dimension_semantics<parallel>, #tpu.dimension_semantics<arbitrary>], iteration_bounds = array<i64: 1, 1>, scalar_prefetch = 0 : i64, scratch_operands = 1 : i64, tpu.core_type = #tpu.core_type<tc>, window_params = [{transform_indices = @transform_0, window_bounds = array<i64: 128, 128>}, {transform_indices = @transform_1, window_bounds = array<i64: 128, 128>}, {transform_indices = @transform_2, window_bounds = array<i64: 128, 1>}]} {
    %c0_i32 = arith.constant 0 : i32
    %0 = arith.cmpi eq, %arg1, %c0_i32 : i32
    %1 = arith.extui %0 : i1 to i32
    %c0_i32_0 = arith.constant 0 : i32
    %2 = arith.cmpi ne, %1, %c0_i32_0 : i32
    scf.if %2 {
      %cst_10 = arith.constant 0.000000e+00 : f32
      %14 = vector.broadcast %cst_10 : f32 to vector<128x1xf32>
      %c0_11 = arith.constant 0 : index
      %c0_12 = arith.constant 0 : index
      %15 = vector.load %arg5[%c0_11, %c0_12] : memref<128x1xf32, #tpu.memory_space<vmem>>, vector<128x1xf32>
      tpu.vector_store %arg5[%c0_11, %c0_12], %14 {strides = array<i32>} : memref<128x1xf32, #tpu.memory_space<vmem>>, vector<128x1xf32>,
    } else {
    }
    %c0 = arith.constant 0 : index
    %c0_1 = arith.constant 0 : index
    %3 = vector.load %arg2[%c0, %c0_1] : memref<128x128xf32, #tpu.memory_space<vmem>>, vector<128x128xf32>
    %c0_2 = arith.constant 0 : index
    %c0_3 = arith.constant 0 : index
    %4 = vector.load %arg5[%c0_2, %c0_3] : memref<128x1xf32, #tpu.memory_space<vmem>>, vector<128x1xf32>
    %cst = arith.constant dense<0.000000e+00> : vector<128xf32>
    %5 = vector.multi_reduction <add>, %3, %cst [1] : vector<128x128xf32> to vector<128xf32>
    %6 = vector.shape_cast %5 : vector<128xf32> to vector<128x1xf32>
    %7 = arith.addf %4, %6 : vector<128x1xf32>
    %c0_4 = arith.constant 0 : index
    %c0_5 = arith.constant 0 : index
    %8 = vector.load %arg5[%c0_4, %c0_5] : memref<128x1xf32, #tpu.memory_space<vmem>>, vector<128x1xf32>
    tpu.vector_store %arg5[%c0_4, %c0_5], %7 {strides = array<i32>} : memref<128x1xf32, #tpu.memory_space<vmem>>, vector<128x1xf32>,
    %9 = arith.truncf %3 : vector<128x128xf32> to vector<128x128xbf16>
    %c0_6 = arith.constant 0 : index
    %c0_7 = arith.constant 0 : index
    %10 = vector.load %arg3[%c0_6, %c0_7] : memref<128x128xbf16, #tpu.memory_space<vmem>>, vector<128x128xbf16>
    tpu.vector_store %arg3[%c0_6, %c0_7], %9 {strides = array<i32>} : memref<128x128xbf16, #tpu.memory_space<vmem>>, vector<128x128xbf16>,
    %c0_i32_8 = arith.constant 0 : i32
    %11 = arith.cmpi eq, %arg1, %c0_i32_8 : i32
    %12 = arith.extui %11 : i1 to i32
    %c0_i32_9 = arith.constant 0 : i32
    %13 = arith.cmpi ne, %12, %c0_i32_9 : i32
    scf.if %13 {
      %c0_10 = arith.constant 0 : index
      %c0_11 = arith.constant 0 : index
      %14 = vector.load %arg5[%c0_10, %c0_11] : memref<128x1xf32, #tpu.memory_space<vmem>>, vector<128x1xf32>
      %cst_12 = arith.constant 0.000000e+00 : f32
      %15 = vector.broadcast %cst_12 : f32 to vector<128x1xf32>
      %16 = arith.cmpf ogt, %14, %15 : vector<128x1xf32>
      %17 = math.rsqrt %14 : vector<128x1xf32>
      %cst_13 = arith.constant 0.000000e+00 : f32
      %18 = vector.broadcast %cst_13 : f32 to vector<128x1xf32>
      %19 = arith.select %16, %17, %18 : vector<128x1xi1>, vector<128x1xf32>
      %c0_14 = arith.constant 0 : index
      %c0_15 = arith.constant 0 : index
      %20 = vector.load %arg4[%c0_14, %c0_15] : memref<128x1xf32, #tpu.memory_space<vmem>>, vector<128x1xf32>
      tpu.vector_store %arg4[%c0_14, %c0_15], %19 {strides = array<i32>} : memref<128x1xf32, #tpu.memory_space<vmem>>, vector<128x1xf32>,
    } else {
    }
    return
  }
  func.func @transform_0(%arg0: i32, %arg1: i32) -> (i32, i32) {
    %c0_i32 = arith.constant 0 : i32
    return %arg0, %arg1 : i32, i32
  }
  func.func @transform_1(%arg0: i32, %arg1: i32) -> (i32, i32) {
    %c0_i32 = arith.constant 0 : i32
    return %arg0, %arg1 : i32, i32
  }
  func.func @transform_2(%arg0: i32, %arg1: i32) -> (i32, i32) {
    %c0_i32 = arith.constant 0 : i32
    %c0_i32_0 = arith.constant 0 : i32
    return %arg0, %c0_i32 : i32, i32
  }
}

module attributes {stable_mosaic.version = 11 : i64} {
  func.func @_xw_kernel(%arg0: i32, %arg1: memref<128x128xbf16, #tpu.memory_space<vmem>>, %arg2: memref<128x128xbf16, #tpu.memory_space<vmem>>, %arg3: memref<128x1xf32, #tpu.memory_space<vmem>>, %arg4: memref<128x128xbf16, #tpu.memory_space<vmem>>) attributes {dimension_semantics = [#tpu.dimension_semantics<parallel>], iteration_bounds = array<i64: 1>, scalar_prefetch = 0 : i64, scratch_operands = 0 : i64, tpu.core_type = #tpu.core_type<tc>, window_params = [{transform_indices = @transform_0, window_bounds = array<i64: 128, 128>}, {pipeline_mode = #tpu.pipeline_mode<synchronous>, transform_indices = @transform_1, window_bounds = array<i64: 128, 128>}, {transform_indices = @transform_2, window_bounds = array<i64: 128, 1>}, {transform_indices = @transform_3, window_bounds = array<i64: 128, 128>}]} {
    %c0 = arith.constant 0 : index
    %c0_0 = arith.constant 0 : index
    %0 = vector.load %arg1[%c0, %c0_0] : memref<128x128xbf16, #tpu.memory_space<vmem>>, vector<128x128xbf16>
    %c0_1 = arith.constant 0 : index
    %c0_2 = arith.constant 0 : index
    %1 = vector.load %arg2[%c0_1, %c0_2] : memref<128x128xbf16, #tpu.memory_space<vmem>>, vector<128x128xbf16>
    %cst = arith.constant dense<0.000000e+00> : vector<128x128xf32>
    %2 = tpu.matmul %0, %1, %cst {dimension_numbers = #tpu.dot_dimension_numbers<[1], [0], [0], [1], [0, 0, 1, 1], [], []>} : vector<128x128xbf16>, vector<128x128xbf16>, vector<128x128xf32> -> vector<128x128xf32>
    %c0_3 = arith.constant 0 : index
    %c0_4 = arith.constant 0 : index
    %3 = vector.load %arg3[%c0_3, %c0_4] : memref<128x1xf32, #tpu.memory_space<vmem>>, vector<128x1xf32>
    %4 = vector.broadcast %3 : vector<128x1xf32> to vector<128x128xf32>
    %5 = arith.mulf %4, %2 : vector<128x128xf32>
    %6 = arith.truncf %5 : vector<128x128xf32> to vector<128x128xbf16>
    %c0_5 = arith.constant 0 : index
    %c0_6 = arith.constant 0 : index
    %7 = vector.load %arg4[%c0_5, %c0_6] : memref<128x128xbf16, #tpu.memory_space<vmem>>, vector<128x128xbf16>
    tpu.vector_store %arg4[%c0_5, %c0_6], %6 {strides = array<i32>} : memref<128x128xbf16, #tpu.memory_space<vmem>>, vector<128x128xbf16>,
    return
  }
  func.func @transform_0(%arg0: i32) -> (i32, i32) {
    %c0_i32 = arith.constant 0 : i32
    %c0_i32_0 = arith.constant 0 : i32
    return %arg0, %c0_i32 : i32, i32
  }
  func.func @transform_1(%arg0: i32) -> (i32, i32) {
    %c0_i32 = arith.constant 0 : i32
    %c0_i32_0 = arith.constant 0 : i32
    %c0_i32_1 = arith.constant 0 : i32
    return %c0_i32, %c0_i32_0 : i32, i32
  }
  func.func @transform_2(%arg0: i32) -> (i32, i32) {
    %c0_i32 = arith.constant 0 : i32
    %c0_i32_0 = arith.constant 0 : i32
    return %arg0, %c0_i32 : i32, i32
  }
  func.func @transform_3(%arg0: i32) -> (i32, i32) {
    %c0_i32 = arith.constant 0 : i32
    %c0_i32_0 = arith.constant 0 : i32
    return %arg0, %c0_i32 : i32, i32
  }
}

module attributes {stable_mosaic.version = 11 : i64} {
  func.func @_prop_kernel(%arg0: i32, %arg1: i32, %arg2: memref<128x128xbf16, #tpu.memory_space<vmem>>, %arg3: memref<128x128xbf16, #tpu.memory_space<vmem>>, %arg4: memref<128x1xf32, #tpu.memory_space<vmem>>, %arg5: memref<1x128xf32, #tpu.memory_space<vmem>>, %arg6: memref<128x128xf32, #tpu.memory_space<vmem>>, %arg7: memref<128x128xbf16, #tpu.memory_space<vmem>>, %arg8: memref<128x128xf32, #tpu.memory_space<vmem>>) attributes {dimension_semantics = [#tpu.dimension_semantics<parallel>, #tpu.dimension_semantics<arbitrary>], iteration_bounds = array<i64: 1, 1>, scalar_prefetch = 0 : i64, scratch_operands = 1 : i64, tpu.core_type = #tpu.core_type<tc>, window_params = [{transform_indices = @transform_0, window_bounds = array<i64: 128, 128>}, {transform_indices = @transform_1, window_bounds = array<i64: 128, 128>}, {transform_indices = @transform_2, window_bounds = array<i64: 128, 1>}, {pipeline_mode = #tpu.pipeline_mode<synchronous>, transform_indices = @transform_3, window_bounds = array<i64: 1, 128>}, {transform_indices = @transform_4, window_bounds = array<i64: 128, 128>}, {transform_indices = @transform_5, window_bounds = array<i64: 128, 128>}]} {
    %c0_i32 = arith.constant 0 : i32
    %0 = arith.cmpi eq, %arg1, %c0_i32 : i32
    %1 = arith.extui %0 : i1 to i32
    %c0_i32_0 = arith.constant 0 : i32
    %2 = arith.cmpi ne, %1, %c0_i32_0 : i32
    scf.if %2 {
      %cst_10 = arith.constant 0.000000e+00 : f32
      %12 = vector.broadcast %cst_10 : f32 to vector<128x128xf32>
      %c0_11 = arith.constant 0 : index
      %c0_12 = arith.constant 0 : index
      %13 = vector.load %arg8[%c0_11, %c0_12] : memref<128x128xf32, #tpu.memory_space<vmem>>, vector<128x128xf32>
      tpu.vector_store %arg8[%c0_11, %c0_12], %12 {strides = array<i32>} : memref<128x128xf32, #tpu.memory_space<vmem>>, vector<128x128xf32>,
    } else {
    }
    %c0 = arith.constant 0 : index
    %c0_1 = arith.constant 0 : index
    %3 = vector.load %arg8[%c0, %c0_1] : memref<128x128xf32, #tpu.memory_space<vmem>>, vector<128x128xf32>
    %c0_2 = arith.constant 0 : index
    %c0_3 = arith.constant 0 : index
    %4 = vector.load %arg2[%c0_2, %c0_3] : memref<128x128xbf16, #tpu.memory_space<vmem>>, vector<128x128xbf16>
    %c0_4 = arith.constant 0 : index
    %c0_5 = arith.constant 0 : index
    %5 = vector.load %arg3[%c0_4, %c0_5] : memref<128x128xbf16, #tpu.memory_space<vmem>>, vector<128x128xbf16>
    %cst = arith.constant dense<0.000000e+00> : vector<128x128xf32>
    %6 = tpu.matmul %4, %5, %cst {dimension_numbers = #tpu.dot_dimension_numbers<[1], [0], [0], [1], [0, 0, 1, 1], [], []>} : vector<128x128xbf16>, vector<128x128xbf16>, vector<128x128xf32> -> vector<128x128xf32>
    %7 = arith.addf %3, %6 : vector<128x128xf32>
    %c0_6 = arith.constant 0 : index
    %c0_7 = arith.constant 0 : index
    %8 = vector.load %arg8[%c0_6, %c0_7] : memref<128x128xf32, #tpu.memory_space<vmem>>, vector<128x128xf32>
    tpu.vector_store %arg8[%c0_6, %c0_7], %7 {strides = array<i32>} : memref<128x128xf32, #tpu.memory_space<vmem>>, vector<128x128xf32>,
    %c0_i32_8 = arith.constant 0 : i32
    %9 = arith.cmpi eq, %arg1, %c0_i32_8 : i32
    %10 = arith.extui %9 : i1 to i32
    %c0_i32_9 = arith.constant 0 : i32
    %11 = arith.cmpi ne, %10, %c0_i32_9 : i32
    scf.if %11 {
      %c0_10 = arith.constant 0 : index
      %c0_11 = arith.constant 0 : index
      %12 = vector.load %arg4[%c0_10, %c0_11] : memref<128x1xf32, #tpu.memory_space<vmem>>, vector<128x1xf32>
      %c0_12 = arith.constant 0 : index
      %c0_13 = arith.constant 0 : index
      %13 = vector.load %arg8[%c0_12, %c0_13] : memref<128x128xf32, #tpu.memory_space<vmem>>, vector<128x128xf32>
      %14 = vector.broadcast %12 : vector<128x1xf32> to vector<128x128xf32>
      %15 = arith.mulf %14, %13 : vector<128x128xf32>
      %c0_14 = arith.constant 0 : index
      %c0_15 = arith.constant 0 : index
      %16 = vector.load %arg5[%c0_14, %c0_15] : memref<1x128xf32, #tpu.memory_space<vmem>>, vector<1x128xf32>
      %17 = vector.broadcast %16 : vector<1x128xf32> to vector<128x128xf32>
      %18 = arith.addf %15, %17 : vector<128x128xf32>
      %19 = math.tanh %18 : vector<128x128xf32>
      %c0_16 = arith.constant 0 : index
      %c0_17 = arith.constant 0 : index
      %20 = vector.load %arg6[%c0_16, %c0_17] : memref<128x128xf32, #tpu.memory_space<vmem>>, vector<128x128xf32>
      tpu.vector_store %arg6[%c0_16, %c0_17], %19 {strides = array<i32>} : memref<128x128xf32, #tpu.memory_space<vmem>>, vector<128x128xf32>,
      %21 = arith.truncf %19 : vector<128x128xf32> to vector<128x128xbf16>
      %c0_18 = arith.constant 0 : index
      %c0_19 = arith.constant 0 : index
      %22 = vector.load %arg7[%c0_18, %c0_19] : memref<128x128xbf16, #tpu.memory_space<vmem>>, vector<128x128xbf16>
      tpu.vector_store %arg7[%c0_18, %c0_19], %21 {strides = array<i32>} : memref<128x128xbf16, #tpu.memory_space<vmem>>, vector<128x128xbf16>,
    } else {
    }
    return
  }
  func.func @transform_0(%arg0: i32, %arg1: i32) -> (i32, i32) {
    %c0_i32 = arith.constant 0 : i32
    return %arg0, %arg1 : i32, i32
  }
  func.func @transform_1(%arg0: i32, %arg1: i32) -> (i32, i32) {
    %c0_i32 = arith.constant 0 : i32
    %c0_i32_0 = arith.constant 0 : i32
    return %arg1, %c0_i32 : i32, i32
  }
  func.func @transform_2(%arg0: i32, %arg1: i32) -> (i32, i32) {
    %c0_i32 = arith.constant 0 : i32
    %c0_i32_0 = arith.constant 0 : i32
    return %arg0, %c0_i32 : i32, i32
  }
  func.func @transform_3(%arg0: i32, %arg1: i32) -> (i32, i32) {
    %c0_i32 = arith.constant 0 : i32
    %c0_i32_0 = arith.constant 0 : i32
    %c0_i32_1 = arith.constant 0 : i32
    return %c0_i32, %c0_i32_0 : i32, i32
  }
  func.func @transform_4(%arg0: i32, %arg1: i32) -> (i32, i32) {
    %c0_i32 = arith.constant 0 : i32
    %c0_i32_0 = arith.constant 0 : i32
    return %arg0, %c0_i32 : i32, i32
  }
  func.func @transform_5(%arg0: i32, %arg1: i32) -> (i32, i32) {
    %c0_i32 = arith.constant 0 : i32
    %c0_i32_0 = arith.constant 0 : i32
    return %arg0, %c0_i32 : i32, i32
  }
}

module attributes {stable_mosaic.version = 11 : i64} {
  func.func @_decode_kernel(%arg0: i32, %arg1: i32, %arg2: memref<128x128xbf16, #tpu.memory_space<vmem>>, %arg3: memref<128x128xbf16, #tpu.memory_space<vmem>>, %arg4: memref<128x1xi32, #tpu.memory_space<vmem>>, %arg5: memref<1x128xi32, #tpu.memory_space<vmem>>, %arg6: memref<128x128xf32, #tpu.memory_space<vmem>>) attributes {dimension_semantics = [#tpu.dimension_semantics<parallel>, #tpu.dimension_semantics<parallel>], iteration_bounds = array<i64: 1, 1>, scalar_prefetch = 0 : i64, scratch_operands = 0 : i64, tpu.core_type = #tpu.core_type<tc>, window_params = [{transform_indices = @transform_0, window_bounds = array<i64: 128, 128>}, {transform_indices = @transform_1, window_bounds = array<i64: 128, 128>}, {transform_indices = @transform_2, window_bounds = array<i64: 128, 1>}, {transform_indices = @transform_3, window_bounds = array<i64: 1, 128>}, {transform_indices = @transform_4, window_bounds = array<i64: 128, 128>}]} {
    %c0 = arith.constant 0 : index
    %c0_0 = arith.constant 0 : index
    %0 = vector.load %arg4[%c0, %c0_0] : memref<128x1xi32, #tpu.memory_space<vmem>>, vector<128x1xi32>
    %c0_1 = arith.constant 0 : index
    %c0_2 = arith.constant 0 : index
    %1 = vector.load %arg5[%c0_1, %c0_2] : memref<1x128xi32, #tpu.memory_space<vmem>>, vector<1x128xi32>
    %2 = vector.broadcast %0 : vector<128x1xi32> to vector<128x128xi32>
    %3 = vector.broadcast %1 : vector<1x128xi32> to vector<128x128xi32>
    %4 = arith.cmpi eq, %2, %3 : vector<128x128xi32>
    %5 = arith.extui %4 : vector<128x128xi1> to vector<128x128xi32>
    %6 = vector.shape_cast %5 : vector<128x128xi32> to vector<1x128x128xi32>
    %cst = arith.constant dense<-2147483648> : vector<1xi32>
    %7 = vector.multi_reduction <maxsi>, %6, %cst [1, 2] : vector<1x128x128xi32> to vector<1xi32>
    %8 = vector.shape_cast %7 : vector<1xi32> to vector<1x1x1xi32>
    %9 = vector.extract %8[0, 0, 0] : i32 from vector<1x1x1xi32>
    %c1_i32 = arith.constant 1 : i32
    %10 = arith.cmpi eq, %9, %c1_i32 : i32
    %11 = arith.extui %10 : i1 to i32
    %c0_i32 = arith.constant 0 : i32
    %12 = arith.cmpi ne, %11, %c0_i32 : i32
    scf.if %12 {
      %c0_5 = arith.constant 0 : index
      %c0_6 = arith.constant 0 : index
      %16 = vector.load %arg2[%c0_5, %c0_6] : memref<128x128xbf16, #tpu.memory_space<vmem>>, vector<128x128xbf16>
      %c0_7 = arith.constant 0 : index
      %c0_8 = arith.constant 0 : index
      %17 = vector.load %arg3[%c0_7, %c0_8] : memref<128x128xbf16, #tpu.memory_space<vmem>>, vector<128x128xbf16>
      %cst_9 = arith.constant dense<0.000000e+00> : vector<128x128xf32>
      %18 = tpu.matmul %16, %17, %cst_9 {dimension_numbers = #tpu.dot_dimension_numbers<[1], [0], [0], [1], [0, 0, 1, 1], [], []>} : vector<128x128xbf16>, vector<128x128xbf16>, vector<128x128xf32> -> vector<128x128xf32>
      %19 = arith.negf %18 : vector<128x128xf32>
      %20 = math.exp %19 : vector<128x128xf32>
      %cst_10 = arith.constant 1.000000e+00 : f32
      %21 = vector.broadcast %cst_10 : f32 to vector<128x128xf32>
      %22 = arith.addf %21, %20 : vector<128x128xf32>
      %23 = arith.divf %21, %22 : vector<128x128xf32>
      %cst_11 = arith.constant 0.000000e+00 : f32
      %24 = vector.broadcast %cst_11 : f32 to vector<128x128xf32>
      %25 = arith.select %4, %23, %24 : vector<128x128xi1>, vector<128x128xf32>
      %c0_12 = arith.constant 0 : index
      %c0_13 = arith.constant 0 : index
      %26 = vector.load %arg6[%c0_12, %c0_13] : memref<128x128xf32, #tpu.memory_space<vmem>>, vector<128x128xf32>
      tpu.vector_store %arg6[%c0_12, %c0_13], %25 {strides = array<i32>} : memref<128x128xf32, #tpu.memory_space<vmem>>, vector<128x128xf32>,
    } else {
    }
    %c0_i32_3 = arith.constant 0 : i32
    %13 = arith.cmpi eq, %9, %c0_i32_3 : i32
    %14 = arith.extui %13 : i1 to i32
    %c0_i32_4 = arith.constant 0 : i32
    %15 = arith.cmpi ne, %14, %c0_i32_4 : i32
    scf.if %15 {
      %cst_5 = arith.constant 0.000000e+00 : f32
      %16 = vector.broadcast %cst_5 : f32 to vector<128x128xf32>
      %c0_6 = arith.constant 0 : index
      %c0_7 = arith.constant 0 : index
      %17 = vector.load %arg6[%c0_6, %c0_7] : memref<128x128xf32, #tpu.memory_space<vmem>>, vector<128x128xf32>
      tpu.vector_store %arg6[%c0_6, %c0_7], %16 {strides = array<i32>} : memref<128x128xf32, #tpu.memory_space<vmem>>, vector<128x128xf32>,
    } else {
    }
    return
  }
  func.func @transform_0(%arg0: i32, %arg1: i32) -> (i32, i32) {
    %c0_i32 = arith.constant 0 : i32
    %c0_i32_0 = arith.constant 0 : i32
    return %arg0, %c0_i32 : i32, i32
  }
  func.func @transform_1(%arg0: i32, %arg1: i32) -> (i32, i32) {
    %c0_i32 = arith.constant 0 : i32
    %c0_i32_0 = arith.constant 0 : i32
    return %c0_i32, %arg1 : i32, i32
  }
  func.func @transform_2(%arg0: i32, %arg1: i32) -> (i32, i32) {
    %c0_i32 = arith.constant 0 : i32
    %c0_i32_0 = arith.constant 0 : i32
    return %arg0, %c0_i32 : i32, i32
  }
  func.func @transform_3(%arg0: i32, %arg1: i32) -> (i32, i32) {
    %c0_i32 = arith.constant 0 : i32
    %c0_i32_0 = arith.constant 0 : i32
    return %c0_i32, %arg1 : i32, i32
  }
  func.func @transform_4(%arg0: i32, %arg1: i32) -> (i32, i32) {
    %c0_i32 = arith.constant 0 : i32
    return %arg0, %arg1 : i32, i32
  }
}

</mosaic_0001>

<bundles_post_ra>
// kernel: decoder_forward.6
= control target key start
LH: loop header
LB: loop body
LE: loop exit
PB: predicated region body
PF: predicated region fallthrough
CT: control target
= control target key end

     0   :  { %8 = vsyncpa [#allocation4], 0  ;;  %s453_s9 = smov [#allocation3]   ;;  %s604_s0 = inlined_call_operand.hbm [shape: f32[128,128], index: 0, kind: input, shape index: {}]   ;;  %s605_s1 = inlined_call_operand.vmem [shape: bf16[128,128], index: 1, kind: output, shape index: {0}]   ;;  %s606_s2 = inlined_call_operand.vmem [shape: f32[128,1], index: 2, kind: output, shape index: {1}]  }
   0x1   :  { %s14_s10 = sshll.u32 %s453_s9, 4  ;;  %s429_s13 = scalar_lea.hbm %s604_s0, 2048  ;;  %s15_s10 = int_to_ptr.vmem [resolvable:$true] %s14_s10 }
   0x2   :  { %p430_p0 = scmp.ne.s32.totalorder %s604_s0, %s429_s13  ;;  %p433_p1 = scmp.lt.u32.totalorder %s429_s13, %s604_s0 }
   0x4   :  { %p435_p2 = pnand %p433_p1, %p430_p0 }
   0x6   :  { %438 = shalt.err (!%p435_p2)
}
   0x7   :  { %s439_s18 = scalar_lea.vmem %s15_s10, 2048  ;;  %p444_p4 = scmp.lt.s32.totalorder %s15_s10, %s15_s10 }
   0x8   :  { %p440_p3 = scmp.ne.s32.totalorder %s15_s10, %s439_s18  ;;  %p445_p5 = scmp.lt.s32.totalorder %s439_s18, %s439_s18 }
   0xa   :  { %p446_p6 = por %p445_p5, %p444_p4 }
   0xc   :  { %p447_p7 = pnand %p446_p6, %p440_p3 }
   0xe   :  { %450 = shalt.err (!%p447_p7)
}
   0xf   :  { %s454_s19 = smov 128   ;;  %s455_s20 = smov 8  }
  0x10   :  { %20 = dma.hbm_to_vmem [thread:$0]  %s604_s0, 2048, %s15_s10, [#allocation4], %s454_s19, %s454_s19, %s455_s20  }
  0x11   :  { %451 = dma.done.wait [#allocation4], 2048  }
  0x12   :  { %452 = vsyncadd [#allocation4], 4294965248  ;;  %vm28_vm0 = vcmask 7168   ;;  %v456_v0 = vmov 0.0   ;;  %v47_v1 = vld [vmem:[#allocation3 + $0x10] sm:$0xff]  ;;  %v45_v2 = vld [vmem:[#allocation3] sm:$0xff] }
  0x13   :  { %31 = vst.msk [vmem:[#allocation2 + $0x10] sm:$0xff] %vm28_vm0, %v456_v0  ;;  %29 = vst.msk [vmem:[#allocation2] sm:$0xff] %vm28_vm0, %v456_v0  ;;  %v48_v3 = vld [vmem:[#allocation3 + $0x18] sm:$0xff]  ;;  %81 = vadd.xlane.f32.xlu1 %v47_v1  ;;  %77 = vadd.xlane.f32.xlu0 %v45_v2  ;;  %v46_v5 = vld [vmem:[#allocation3 + $0x8] sm:$0xff] }
  0x14   :  { %30 = vst.msk [vmem:[#allocation2 + $0x8] sm:$0xff] %vm28_vm0, %v456_v0  ;;  %32 = vst.msk [vmem:[#allocation2 + $0x18] sm:$0xff] %vm28_vm0, %v456_v0  ;;  %v354_v4 = vpack.c.bf16 %v48_v3, %v47_v1  ;;  %v50_v6 = vld [vmem:[#allocation3 + $0x28] sm:$0xff]  ;;  %v49_v7 = vld [vmem:[#allocation3 + $0x20] sm:$0xff]  ;;  %v349_v8 = vpack.c.bf16 %v46_v5, %v45_v2 }
  0x15   :  { %33 = vst.msk [vmem:[#allocation2 + $0x20] sm:$0xff] %vm28_vm0, %v456_v0  ;;  %34 = vst.msk [vmem:[#allocation2 + $0x28] sm:$0xff] %vm28_vm0, %v456_v0  ;;  %v359_v9 = vpack.c.bf16 %v50_v6, %v49_v7  ;;  %v52_v10 = vld [vmem:[#allocation3 + $0x38] sm:$0xff]  ;;  %v51_v11 = vld [vmem:[#allocation3 + $0x30] sm:$0xff] }
  0x16   :  { %35 = vst.msk [vmem:[#allocation2 + $0x30] sm:$0xff] %vm28_vm0, %v456_v0  ;;  %36 = vst.msk [vmem:[#allocation2 + $0x38] sm:$0xff] %vm28_vm0, %v456_v0  ;;  %v54_v12 = vld [vmem:[#allocation3 + $0x48] sm:$0xff]  ;;  %v364_v13 = vpack.c.bf16 %v52_v10, %v51_v11  ;;  %v53_v14 = vld [vmem:[#allocation3 + $0x40] sm:$0xff] }
  0x17   :  { %37 = vst.msk [vmem:[#allocation2 + $0x40] sm:$0xff] %vm28_vm0, %v456_v0  ;;  %38 = vst.msk [vmem:[#allocation2 + $0x48] sm:$0xff] %vm28_vm0, %v456_v0  ;;  %v56_v15 = vld [vmem:[#allocation3 + $0x58] sm:$0xff]  ;;  %v55_v16 = vld [vmem:[#allocation3 + $0x50] sm:$0xff]  ;;  %v369_v17 = vpack.c.bf16 %v54_v12, %v53_v14  ;;  %83 = vadd.xlane.f32.xlu1 %v48_v3  ;;  %79 = vadd.xlane.f32.xlu0 %v46_v5 }
  0x18   :  { %39 = vst.msk [vmem:[#allocation2 + $0x50] sm:$0xff] %vm28_vm0, %v456_v0  ;;  %40 = vst.msk [vmem:[#allocation2 + $0x58] sm:$0xff] %vm28_vm0, %v456_v0  ;;  %v374_v18 = vpack.c.bf16 %v56_v15, %v55_v16  ;;  %v58_v19 = vld [vmem:[#allocation3 + $0x68] sm:$0xff]  ;;  %v57_v20 = vld [vmem:[#allocation3 + $0x60] sm:$0xff] }
  0x19   :  { %41 = vst.msk [vmem:[#allocation2 + $0x60] sm:$0xff] %vm28_vm0, %v456_v0  ;;  %42 = vst.msk [vmem:[#allocation2 + $0x68] sm:$0xff] %vm28_vm0, %v456_v0  ;;  %v379_v21 = vpack.c.bf16 %v58_v19, %v57_v20  ;;  %v60_v22 = vld [vmem:[#allocation3 + $0x78] sm:$0xff]  ;;  %v59_v23 = vld [vmem:[#allocation3 + $0x70] sm:$0xff] }
  0x1a   :  { %43 = vst.msk [vmem:[#allocation2 + $0x70] sm:$0xff] %vm28_vm0, %v456_v0  ;;  %44 = vst.msk [vmem:[#allocation2 + $0x78] sm:$0xff] %vm28_vm0, %v456_v0  ;;  %v384_v24 = vpack.c.bf16 %v60_v22, %v59_v23  ;;  %v63_v25 = vld [vmem:[#allocation2 + $0x10] sm:$0xff]  ;;  %v61_v26 = vld [vmem:[#allocation2] sm:$0xff] }
  0x1b   :  { %386 = vst [vmem:[%s605_s1 + $0x8] sm:$0xff] %v354_v4   ;;  %350 = vst [vmem:[%s605_s1] sm:$0xff] %v349_v8   ;;  %87 = vadd.xlane.f32.xlu1 %v50_v6  ;;  %85 = vadd.xlane.f32.xlu0 %v49_v7  ;;  %v64_v31 = vld [vmem:[#allocation2 + $0x18] sm:$0xff]  ;;  %v62_v32 = vld [vmem:[#allocation2 + $0x8] sm:$0xff] }
  0x1c   :  { %387 = vst [vmem:[%s605_s1 + $0x10] sm:$0xff] %v359_v9   ;;  %388 = vst [vmem:[%s605_s1 + $0x18] sm:$0xff] %v364_v13   ;;  %v66_v37 = vld [vmem:[#allocation2 + $0x28] sm:$0xff]  ;;  %v65_v38 = vld [vmem:[#allocation2 + $0x20] sm:$0xff] }
  0x1d   :  { %389 = vst [vmem:[%s605_s1 + $0x20] sm:$0xff] %v369_v17   ;;  %390 = vst [vmem:[%s605_s1 + $0x28] sm:$0xff] %v374_v18   ;;  %v68_v43 = vld [vmem:[#allocation2 + $0x38] sm:$0xff]  ;;  %v67_v46 = vld [vmem:[#allocation2 + $0x30] sm:$0xff] }
  0x1e   :  { %391 = vst [vmem:[%s605_s1 + $0x30] sm:$0xff] %v379_v21   ;;  %392 = vst [vmem:[%s605_s1 + $0x38] sm:$0xff] %v384_v24   ;;  %v70_v51 = vld [vmem:[#allocation2 + $0x48] sm:$0xff]  ;;  %v69_v54 = vld [vmem:[#allocation2 + $0x40] sm:$0xff] }
  0x1f   :  { %91 = vadd.xlane.f32.xlu1 %v52_v10  ;;  %89 = vadd.xlane.f32.xlu0 %v51_v11  ;;  %v72_v59 = vld [vmem:[#allocation2 + $0x58] sm:$0xff]  ;;  %v71_v62 = vld [vmem:[#allocation2 + $0x50] sm:$0xff] }
  0x20   :  { %v74_v4 = vld [vmem:[#allocation2 + $0x68] sm:$0xff]  ;;  %v73_v9 = vld [vmem:[#allocation2 + $0x60] sm:$0xff] }
  0x21   :  { %v75_v21 = vld [vmem:[#allocation2 + $0x70] sm:$0xff] }
  0x23   :  { %95 = vadd.xlane.f32.xlu1 %v54_v12  ;;  %93 = vadd.xlane.f32.xlu0 %v53_v14 }
  0x27   :  { %99 = vadd.xlane.f32.xlu1 %v56_v15  ;;  %97 = vadd.xlane.f32.xlu0 %v55_v16  ;;  %v76_v16 = vld [vmem:[#allocation2 + $0x78] sm:$0xff] }
  0x2b   :  { %103 = vadd.xlane.f32.xlu1 %v58_v19  ;;  %101 = vadd.xlane.f32.xlu0 %v57_v20 }
  0x2f   :  { %107 = vadd.xlane.f32.xlu1 %v60_v22  ;;  %105 = vadd.xlane.f32.xlu0 %v59_v23 }
  0xa0   :  { %v82_v27 = vpop.xlane.xlu1 %81  ;;  %v78_v28 = vpop.xlane.xlu0 %77 }
  0xa1   :  { %v111_v29 = vadd.f32 %v82_v27, %v63_v25  ;;  %v109_v30 = vadd.f32 %v78_v28, %v61_v26 }
  0xa3   :  { %128 = vst.msk [vmem:[#allocation2 + $0x10] sm:$0xff] %vm28_vm0, %v111_v29  ;;  %126 = vst.msk [vmem:[#allocation2] sm:$0xff] %vm28_vm0, %v109_v30 }
  0xa4   :  { %v84_v33 = vpop.xlane.xlu1 %83  ;;  %v80_v34 = vpop.xlane.xlu0 %79 }
  0xa5   :  { %v112_v35 = vadd.f32 %v84_v33, %v64_v31  ;;  %v110_v36 = vadd.f32 %v80_v34, %v62_v32 }
  0xa7   :  { %129 = vst.msk [vmem:[#allocation2 + $0x18] sm:$0xff] %vm28_vm0, %v112_v35  ;;  %127 = vst.msk [vmem:[#allocation2 + $0x8] sm:$0xff] %vm28_vm0, %v110_v36 }
  0xa8   :  { %v88_v39 = vpop.xlane.xlu1 %87  ;;  %v86_v40 = vpop.xlane.xlu0 %85 }
  0xa9   :  { %v114_v41 = vadd.f32 %v88_v39, %v66_v37  ;;  %v113_v42 = vadd.f32 %v86_v40, %v65_v38 }
  0xaa   :  { %v227_v44 = vld [vmem:[#allocation2 + $0x10] sm:$0xff]  ;;  %v225_v45 = vld [vmem:[#allocation2] sm:$0xff] }
  0xab   :  { %397 = vrsqrt.f32 %v227_v44  ;;  %131 = vst.msk [vmem:[#allocation2 + $0x28] sm:$0xff] %vm28_vm0, %v114_v41  ;;  %130 = vst.msk [vmem:[#allocation2 + $0x20] sm:$0xff] %vm28_vm0, %v113_v42  ;;  %vm243_vm1 = vcmp.gt.f32.partialorder %v227_v44, 0.0  ;;  %vm241_vm2 = vcmp.gt.f32.partialorder %v225_v45, 0.0 }
  0xac   :  { %399 = vrsqrt.f32 %v225_v45  ;;  %v92_v47 = vpop.xlane.xlu1 %91  ;;  %v90_v48 = vpop.xlane.xlu0 %89 }
  0xad   :  { %v116_v49 = vadd.f32 %v92_v47, %v68_v43  ;;  %v115_v50 = vadd.f32 %v90_v48, %v67_v46 }
  0xae   :  { %v228_v52 = vld [vmem:[#allocation2 + $0x18] sm:$0xff]  ;;  %v226_v53 = vld [vmem:[#allocation2 + $0x8] sm:$0xff] }
  0xaf   :  { %401 = vrsqrt.f32 %v228_v52  ;;  %133 = vst.msk [vmem:[#allocation2 + $0x38] sm:$0xff] %vm28_vm0, %v116_v49  ;;  %132 = vst.msk [vmem:[#allocation2 + $0x30] sm:$0xff] %vm28_vm0, %v115_v50  ;;  %vm244_vm3 = vcmp.gt.f32.partialorder %v228_v52, 0.0  ;;  %vm242_vm4 = vcmp.gt.f32.partialorder %v226_v53, 0.0 }
  0xb0   :  { %403 = vrsqrt.f32 %v226_v53  ;;  %v96_v55 = vpop.xlane.xlu1 %95  ;;  %v94_v56 = vpop.xlane.xlu0 %93 }
  0xb1   :  { %v118_v57 = vadd.f32 %v96_v55, %v70_v51  ;;  %v117_v58 = vadd.f32 %v94_v56, %v69_v54 }
  0xb2   :  { %v230_v60 = vld [vmem:[#allocation2 + $0x28] sm:$0xff]  ;;  %v229_v61 = vld [vmem:[#allocation2 + $0x20] sm:$0xff] }
  0xb3   :  { %405 = vrsqrt.f32 %v230_v60  ;;  %135 = vst.msk [vmem:[#allocation2 + $0x48] sm:$0xff] %vm28_vm0, %v118_v57  ;;  %134 = vst.msk [vmem:[#allocation2 + $0x40] sm:$0xff] %vm28_vm0, %v117_v58  ;;  %vm246_vm5 = vcmp.gt.f32.partialorder %v230_v60, 0.0  ;;  %vm245_vm6 = vcmp.gt.f32.partialorder %v229_v61, 0.0 }
  0xb4   :  { %407 = vrsqrt.f32 %v229_v61  ;;  %v100_v63 = vpop.xlane.xlu1 %99  ;;  %v98_v0 = vpop.xlane.xlu0 %97 }
  0xb5   :  { %v398_v1 = vpop.eup %397  ;;  %v120_v2 = vadd.f32 %v100_v63, %v72_v59  ;;  %v119_v3 = vadd.f32 %v98_v0, %v71_v62 }
  0xb6   :  { %v400_v5 = vpop.eup %399  ;;  %v275_v6 = vsel %vm243_vm1, %v398_v1, 0.0  ;;  %v232_v7 = vld [vmem:[#allocation2 + $0x38] sm:$0xff]  ;;  %v231_v8 = vld [vmem:[#allocation2 + $0x30] sm:$0xff] }
  0xb7   :  { %291 = vst.msk [vmem:[%s606_s2 + $0x10] sm:$0xff] %vm28_vm0, %v275_v6  ;;  %v273_v10 = vsel %vm241_vm2, %v400_v5, 0.0  ;;  %409 = vrsqrt.f32 %v232_v7  ;;  %137 = vst.msk [vmem:[#allocation2 + $0x58] sm:$0xff] %vm28_vm0, %v120_v2  ;;  %vm248_vm7 = vcmp.gt.f32.partialorder %v232_v7, 0.0  ;;  %vm247_vm8 = vcmp.gt.f32.partialorder %v231_v8, 0.0 }
  0xb8   :  { %136 = vst.msk [vmem:[#allocation2 + $0x50] sm:$0xff] %vm28_vm0, %v119_v3  ;;  %289 = vst.msk [vmem:[%s606_s2] sm:$0xff] %vm28_vm0, %v273_v10  ;;  %411 = vrsqrt.f32 %v231_v8  ;;  %v104_v11 = vpop.xlane.xlu1 %103  ;;  %v102_v12 = vpop.xlane.xlu0 %101 }
  0xb9   :  { %v402_v13 = vpop.eup %401  ;;  %v122_v14 = vadd.f32 %v104_v11, %v74_v4  ;;  %v121_v15 = vadd.f32 %v102_v12, %v73_v9 }
  0xba   :  { %v404_v17 = vpop.eup %403  ;;  %v276_v18 = vsel %vm244_vm3, %v402_v13, 0.0  ;;  %v234_v19 = vld [vmem:[#allocation2 + $0x48] sm:$0xff]  ;;  %v233_v20 = vld [vmem:[#allocation2 + $0x40] sm:$0xff] }
  0xbb   :  { %292 = vst.msk [vmem:[%s606_s2 + $0x18] sm:$0xff] %vm28_vm0, %v276_v18  ;;  %v274_v22 = vsel %vm242_vm4, %v404_v17, 0.0  ;;  %413 = vrsqrt.f32 %v234_v19  ;;  %139 = vst.msk [vmem:[#allocation2 + $0x68] sm:$0xff] %vm28_vm0, %v122_v14  ;;  %vm250_vm9 = vcmp.gt.f32.partialorder %v234_v19, 0.0  ;;  %vm249_vm10 = vcmp.gt.f32.partialorder %v233_v20, 0.0 }
  0xbc   :  { %138 = vst.msk [vmem:[#allocation2 + $0x60] sm:$0xff] %vm28_vm0, %v121_v15  ;;  %290 = vst.msk [vmem:[%s606_s2 + $0x8] sm:$0xff] %vm28_vm0, %v274_v22  ;;  %415 = vrsqrt.f32 %v233_v20  ;;  %v108_v23 = vpop.xlane.xlu1 %107  ;;  %v106_v24 = vpop.xlane.xlu0 %105 }
  0xbd   :  { %v406_v25 = vpop.eup %405  ;;  %v124_v26 = vadd.f32 %v108_v23, %v76_v16  ;;  %v123_v27 = vadd.f32 %v106_v24, %v75_v21 }
  0xbe   :  { %v408_v28 = vpop.eup %407  ;;  %v278_v29 = vsel %vm246_vm5, %v406_v25, 0.0  ;;  %v236_v30 = vld [vmem:[#allocation2 + $0x58] sm:$0xff] }
  0xbf   :  { %v235_v31 = vld [vmem:[#allocation2 + $0x50] sm:$0xff]  ;;  %294 = vst.msk [vmem:[%s606_s2 + $0x28] sm:$0xff] %vm28_vm0, %v278_v29  ;;  %v277_v32 = vsel %vm245_vm6, %v408_v28, 0.0  ;;  %417 = vrsqrt.f32 %v236_v30  ;;  %141 = vst.msk [vmem:[#allocation2 + $0x78] sm:$0xff] %vm28_vm0, %v124_v26  ;;  %vm252_vm11 = vcmp.gt.f32.partialorder %v236_v30, 0.0 }
  0xc0   :  { %140 = vst.msk [vmem:[#allocation2 + $0x70] sm:$0xff] %vm28_vm0, %v123_v27  ;;  %293 = vst.msk [vmem:[%s606_s2 + $0x20] sm:$0xff] %vm28_vm0, %v277_v32  ;;  %419 = vrsqrt.f32 %v235_v31  ;;  %vm251_vm12 = vcmp.gt.f32.partialorder %v235_v31, 0.0 }
  0xc1   :  { %v410_v33 = vpop.eup %409 }
  0xc2   :  { %v412_v34 = vpop.eup %411  ;;  %v280_v35 = vsel %vm248_vm7, %v410_v33, 0.0  ;;  %v238_v36 = vld [vmem:[#allocation2 + $0x68] sm:$0xff] }
  0xc3   :  { %v237_v37 = vld [vmem:[#allocation2 + $0x60] sm:$0xff]  ;;  %296 = vst.msk [vmem:[%s606_s2 + $0x38] sm:$0xff] %vm28_vm0, %v280_v35  ;;  %v279_v38 = vsel %vm247_vm8, %v412_v34, 0.0  ;;  %421 = vrsqrt.f32 %v238_v36  ;;  %vm254_vm13 = vcmp.gt.f32.partialorder %v238_v36, 0.0 }
  0xc4   :  { %295 = vst.msk [vmem:[%s606_s2 + $0x30] sm:$0xff] %vm28_vm0, %v279_v38  ;;  %423 = vrsqrt.f32 %v237_v37  ;;  %vm253_vm14 = vcmp.gt.f32.partialorder %v237_v37, 0.0 }
  0xc5   :  { %v414_v39 = vpop.eup %413 }
  0xc6   :  { %v416_v40 = vpop.eup %415  ;;  %v282_v41 = vsel %vm250_vm9, %v414_v39, 0.0  ;;  %v240_v42 = vld [vmem:[#allocation2 + $0x78] sm:$0xff] }
  0xc7   :  { %v239_v43 = vld [vmem:[#allocation2 + $0x70] sm:$0xff]  ;;  %298 = vst.msk [vmem:[%s606_s2 + $0x48] sm:$0xff] %vm28_vm0, %v282_v41  ;;  %v281_v44 = vsel %vm249_vm10, %v416_v40, 0.0  ;;  %425 = vrsqrt.f32 %v240_v42  ;;  %vm256_vm15 = vcmp.gt.f32.partialorder %v240_v42, 0.0 }
  0xc8   :  { %297 = vst.msk [vmem:[%s606_s2 + $0x40] sm:$0xff] %vm28_vm0, %v281_v44  ;;  %427 = vrsqrt.f32 %v239_v43  ;;  %vm255_vm1 = vcmp.gt.f32.partialorder %v239_v43, 0.0 }
  0xc9   :  { %v418_v45 = vpop.eup %417 }
  0xca   :  { %v420_v46 = vpop.eup %419  ;;  %v284_v47 = vsel %vm252_vm11, %v418_v45, 0.0 }
  0xcb   :  { %300 = vst.msk [vmem:[%s606_s2 + $0x58] sm:$0xff] %vm28_vm0, %v284_v47  ;;  %v283_v48 = vsel %vm251_vm12, %v420_v46, 0.0 }
  0xcc   :  { %299 = vst.msk [vmem:[%s606_s2 + $0x50] sm:$0xff] %vm28_vm0, %v283_v48 }
  0xcd   :  { %v422_v49 = vpop.eup %421 }
  0xce   :  { %v424_v50 = vpop.eup %423  ;;  %v286_v51 = vsel %vm254_vm13, %v422_v49, 0.0 }
  0xcf   :  { %302 = vst.msk [vmem:[%s606_s2 + $0x68] sm:$0xff] %vm28_vm0, %v286_v51  ;;  %v285_v52 = vsel %vm253_vm14, %v424_v50, 0.0 }
  0xd0   :  { %301 = vst.msk [vmem:[%s606_s2 + $0x60] sm:$0xff] %vm28_vm0, %v285_v52 }
  0xd1   :  { %v426_v53 = vpop.eup %425 }
  0xd2   :  { %v428_v54 = vpop.eup %427  ;;  %v288_v55 = vsel %vm256_vm15, %v426_v53, 0.0 }
  0xd3   :  { %304 = vst.msk [vmem:[%s606_s2 + $0x78] sm:$0xff] %vm28_vm0, %v288_v55  ;;  %v287_v56 = vsel %vm255_vm1, %v428_v54, 0.0 }
  0xd4   :  { %303 = vst.msk [vmem:[%s606_s2 + $0x70] sm:$0xff] %vm28_vm0, %v287_v56 }
  0xd5   :  { %313 = vsyncpa [#allocation4], 1 }

// kernel: decoder_forward.7
= control target key start
LH: loop header
LB: loop body
LE: loop exit
PB: predicated region body
PF: predicated region fallthrough
CT: control target
= control target key end

     0   :  { %v614_v1 = vmov 0   ;;  %s755_s1 = inlined_call_operand.vmem [shape: bf16[128,128], index: 1, kind: input, shape index: {}]   ;;  %s756_s0 = inlined_call_operand.vmem [shape: bf16[128,128], index: 0, kind: input, shape index: {}]   ;;  %s757_s2 = inlined_call_operand.vmem [shape: f32[128,1], index: 2, kind: input, shape index: {}]   ;;  %s758_s3 = inlined_call_operand.vmem [shape: bf16[128,128], index: 3, kind: output, shape index: {}]  }
   0x1   :  { %v598_v0 = vld [vmem:[%s755_s1] sm:$0xff]   ;;  %597 = vset.pattern.permute.xlu1 %v614_v1  ;;  %596 = vset.pattern.permute.xlu0 %v614_v1  ;;  %v599_v2 = vld [vmem:[%s755_s1 + $0x8] sm:$0xff]   ;;  %v600_v3 = vld [vmem:[%s755_s1 + $0x10] sm:$0xff]  }
   0x2   :  { %547 = vmatprep.subr.bf16.mxu0 %v598_v0  ;;  %579 = vmatprep.subr.bf16.mxu1 %v598_v0  ;;  %v601_v4 = vld [vmem:[%s755_s1 + $0x18] sm:$0xff]   ;;  %v606_v5 = vld [vmem:[%s756_s0] sm:$0xff]   ;;  %v603_v8 = vld [vmem:[%s755_s1 + $0x28] sm:$0xff]  }
   0x3   :  { %548 = vmatpush3.bf16.msra.mxu0 %v598_v0  ;;  %587 = vmatpush3.bf16.msra.mxu1 %v598_v0  ;;  %v607_v6 = vld [vmem:[%s756_s0 + $0x20] sm:$0xff]   ;;  %v242_v9 = vld [vmem:[%s757_s2 + $0x10] sm:$0xff]  ;;  %v243_v11 = vld [vmem:[%s757_s2 + $0x18] sm:$0xff] }
   0x4   :  { %549 = vmatprep.subr.bf16.mxu0 %v599_v2  ;;  %580 = vmatprep.subr.bf16.mxu1 %v599_v2  ;;  %v602_v7 = vld [vmem:[%s755_s1 + $0x20] sm:$0xff]   ;;  %v241_v12 = vld [vmem:[%s757_s2 + $0x8] sm:$0xff]  ;;  %v604_v13 = vld [vmem:[%s755_s1 + $0x30] sm:$0xff]  }
   0x5   :  { %563 = vmatprep.mubr.bf16.mxu0 %v606_v5  ;;  %571 = vmatprep.mubr.bf16.mxu1 %v607_v6  ;;  %v240_v10 = vld [vmem:[%s757_s2] sm:$0xff]  ;;  %v245_v14 = vld [vmem:[%s757_s2 + $0x28] sm:$0xff]  ;;  %v605_v16 = vld [vmem:[%s755_s1 + $0x38] sm:$0xff]  }
   0x6   :  { %268 = vperm.xlu1 %597, %v242_v9   ;;  %258 = vperm.xlu0 %596, %v240_v10   ;;  %v244_v15 = vld [vmem:[%s757_s2 + $0x20] sm:$0xff]  ;;  %v247_v17 = vld [vmem:[%s757_s2 + $0x38] sm:$0xff]  ;;  %v246_v18 = vld [vmem:[%s757_s2 + $0x30] sm:$0xff] }
   0x7   :  { %550 = vmatpush3.bf16.msra.mxu0 %v599_v2  ;;  %588 = vmatpush3.bf16.msra.mxu1 %v599_v2  ;;  %v608_v19 = vld [vmem:[%s756_s0 + $0x8] sm:$0xff]   ;;  %v248_v22 = vld [vmem:[%s757_s2 + $0x40] sm:$0xff]  ;;  %v610_v23 = vld [vmem:[%s756_s0 + $0x10] sm:$0xff]  }
   0x8   :  { %551 = vmatprep.subr.bf16.mxu0 %v600_v3  ;;  %581 = vmatprep.subr.bf16.mxu1 %v600_v3  ;;  %v609_v20 = vld [vmem:[%s756_s0 + $0x28] sm:$0xff]   ;;  %v611_v24 = vld [vmem:[%s756_s0 + $0x30] sm:$0xff]   ;;  %v251_v25 = vld [vmem:[%s757_s2 + $0x58] sm:$0xff] }
   0x9   :  { %v249_v21 = vld [vmem:[%s757_s2 + $0x48] sm:$0xff]  ;;  %v250_v26 = vld [vmem:[%s757_s2 + $0x50] sm:$0xff]  ;;  %v612_v27 = vld [vmem:[%s756_s0 + $0x18] sm:$0xff]  }
   0xa   :  { %273 = vperm.xlu1 %597, %v243_v11   ;;  %263 = vperm.xlu0 %596, %v241_v12   ;;  %v613_v28 = vld [vmem:[%s756_s0 + $0x38] sm:$0xff]   ;;  %v253_v29 = vld [vmem:[%s757_s2 + $0x68] sm:$0xff]  ;;  %v252_v30 = vld [vmem:[%s757_s2 + $0x60] sm:$0xff] }
   0xb   :  { %552 = vmatpush3.bf16.msra.mxu0 %v600_v3  ;;  %589 = vmatpush3.bf16.msra.mxu1 %v600_v3  ;;  %v255_v31 = vld [vmem:[%s757_s2 + $0x78] sm:$0xff]  ;;  %v254_v32 = vld [vmem:[%s757_s2 + $0x70] sm:$0xff] }
   0xc   :  { %553 = vmatprep.subr.bf16.mxu0 %v601_v4  ;;  %582 = vmatprep.subr.bf16.mxu1 %v601_v4 }
   0xe   :  { %283 = vperm.xlu1 %597, %v245_v14   ;;  %278 = vperm.xlu0 %596, %v244_v15  }
   0xf   :  { %554 = vmatpush3.bf16.msra.mxu0 %v601_v4  ;;  %590 = vmatpush3.bf16.msra.mxu1 %v601_v4 }
  0x10   :  { %555 = vmatprep.subr.bf16.mxu0 %v602_v7  ;;  %583 = vmatprep.subr.bf16.mxu1 %v602_v7 }
  0x12   :  { %293 = vperm.xlu1 %597, %v247_v17   ;;  %288 = vperm.xlu0 %596, %v246_v18  }
  0x13   :  { %556 = vmatpush3.bf16.msra.mxu0 %v602_v7  ;;  %591 = vmatpush3.bf16.msra.mxu1 %v602_v7 }
  0x14   :  { %557 = vmatprep.subr.bf16.mxu0 %v603_v8  ;;  %584 = vmatprep.subr.bf16.mxu1 %v603_v8 }
  0x16   :  { %303 = vperm.xlu1 %597, %v249_v21   ;;  %298 = vperm.xlu0 %596, %v248_v22  }
  0x17   :  { %558 = vmatpush3.bf16.msra.mxu0 %v603_v8  ;;  %592 = vmatpush3.bf16.msra.mxu1 %v603_v8 }
  0x18   :  { %559 = vmatprep.subr.bf16.mxu0 %v604_v13  ;;  %585 = vmatprep.subr.bf16.mxu1 %v604_v13 }
  0x1a   :  { %313 = vperm.xlu1 %597, %v251_v25   ;;  %308 = vperm.xlu0 %596, %v250_v26  }
  0x1b   :  { %560 = vmatpush3.bf16.msra.mxu0 %v604_v13  ;;  %593 = vmatpush3.bf16.msra.mxu1 %v604_v13 }
  0x1c   :  { %561 = vmatprep.subr.bf16.mxu0 %v605_v16  ;;  %586 = vmatprep.subr.bf16.mxu1 %v605_v16 }
  0x1e   :  { %323 = vperm.xlu1 %597, %v253_v29   ;;  %318 = vperm.xlu0 %596, %v252_v30  }
  0x1f   :  { %562 = vmatpush3.bf16.msra.mxu0 %v605_v16  ;;  %594 = vmatpush3.bf16.msra.mxu1 %v605_v16 }
  0x22   :  { %564 = vmatmul.mubr.bf16.vlgmr.msra.gmra.mrb[0].mxu0 %v608_v19  ;;  %572 = vmatmul.mubr.bf16.vlgmr.msra.gmra.mrb[0].mxu1 %v609_v20 }
  0x23   :  { %567 = vmatprep.mubr.bf16.mxu0 %v610_v23  ;;  %575 = vmatprep.mubr.bf16.mxu1 %v611_v24 }
  0x24   :  { %333 = vperm.xlu1 %597, %v255_v31   ;;  %328 = vperm.xlu0 %596, %v254_v32  }
  0x2a   :  { %568 = vmatmul.mubr.bf16.gmra.mrb[4].mxu0 %v612_v27  ;;  %576 = vmatmul.mubr.bf16.gmra.mrb[4].mxu1 %v613_v28 }
  0x85   :  { %v269_v33 = vpop.permute.xlu1 %268  ;;  %v259_v34 = vpop.permute.xlu0 %258 }
  0x89   :  { %v274_v35 = vpop.permute.xlu1 %273  ;;  %v264_v36 = vpop.permute.xlu0 %263 }
  0x8d   :  { %v284_v37 = vpop.permute.xlu1 %283  ;;  %v279_v38 = vpop.permute.xlu0 %278 }
  0x91   :  { %v294_v39 = vpop.permute.xlu1 %293  ;;  %v289_v40 = vpop.permute.xlu0 %288 }
  0x95   :  { %v304_v41 = vpop.permute.xlu1 %303  ;;  %v299_v42 = vpop.permute.xlu0 %298 }
  0x99   :  { %v314_v43 = vpop.permute.xlu1 %313  ;;  %v309_v44 = vpop.permute.xlu0 %308 }
  0x9d   :  { %v324_v45 = vpop.permute.xlu1 %323  ;;  %v319_v46 = vpop.permute.xlu0 %318 }
  0xa3   :  { %v334_v3 = vpop.permute.xlu1 %333  ;;  %v329_v4 = vpop.permute.xlu0 %328 }
  0xf5   :  { %v565_v47 = vpop.f32.mrb[0].mxu0  ;;  %v573_v48 = vpop.f32.mrb[0].mxu1 }
  0xf6   :  { %v177_v49 = vpop.f32.mrb[1].mxu0  ;;  %v209_v50 = vpop.f32.mrb[1].mxu1  ;;  %v338_v53 = vmul.f32 %v565_v47, %v269_v33  ;;  %v346_v54 = vmul.f32 %v573_v48, %v309_v44 }
  0xf7   :  { %v566_v51 = vpop.f32.mrb[2].mxu0  ;;  %v574_v52 = vpop.f32.mrb[2].mxu1  ;;  %v336_v59 = vmul.f32 %v259_v34, %v177_v49  ;;  %v344_v60 = vmul.f32 %v299_v42, %v209_v50 }
  0xf8   :  { %v339_v55 = vmul.f32 %v566_v51, %v274_v35  ;;  %v347_v56 = vmul.f32 %v574_v52, %v314_v43  ;;  %v180_v57 = vpop.f32.mrb[3].mxu0  ;;  %v212_v58 = vpop.f32.mrb[3].mxu1 }
  0xf9   :  { %v337_v61 = vmul.f32 %v264_v36, %v180_v57  ;;  %v345_v62 = vmul.f32 %v304_v41, %v212_v58 }
  0xfa   :  { %v492_v63 = vpack.c.bf16 %v339_v55, %v338_v53  ;;  %v512_v0 = vpack.c.bf16 %v347_v56, %v346_v54 }
  0xfb   :  { %v487_v1 = vpack.c.bf16 %v337_v61, %v336_v59  ;;  %v507_v2 = vpack.c.bf16 %v345_v62, %v344_v60 }
  0xfc   :  { %524 = vst [vmem:[%s758_s3 + $0x8] sm:$0xff] %v492_v63   ;;  %528 = vst [vmem:[%s758_s3 + $0x28] sm:$0xff] %v512_v0  }
  0xfd   :  { %488 = vst [vmem:[%s758_s3] sm:$0xff] %v487_v1   ;;  %527 = vst [vmem:[%s758_s3 + $0x20] sm:$0xff] %v507_v2   ;;  %v569_v5 = vpop.f32.mrb[4].mxu0  ;;  %v577_v6 = vpop.f32.mrb[4].mxu1 }
  0xfe   :  { %v193_v7 = vpop.f32.mrb[5].mxu0  ;;  %v225_v8 = vpop.f32.mrb[5].mxu1  ;;  %v342_v11 = vmul.f32 %v569_v5, %v289_v40  ;;  %v350_v12 = vmul.f32 %v577_v6, %v329_v4 }
  0xff   :  { %v570_v9 = vpop.f32.mrb[6].mxu0  ;;  %v578_v10 = vpop.f32.mrb[6].mxu1  ;;  %v340_v17 = vmul.f32 %v279_v38, %v193_v7  ;;  %v348_v18 = vmul.f32 %v319_v46, %v225_v8 }
 0x100   :  { %v343_v13 = vmul.f32 %v570_v9, %v294_v39  ;;  %v351_v14 = vmul.f32 %v578_v10, %v334_v3  ;;  %v196_v15 = vpop.f32.mrb[7].mxu0  ;;  %v228_v16 = vpop.f32.mrb[7].mxu1 }
 0x101   :  { %v341_v19 = vmul.f32 %v284_v37, %v196_v15  ;;  %v349_v20 = vmul.f32 %v324_v45, %v228_v16 }
 0x102   :  { %v502_v21 = vpack.c.bf16 %v343_v13, %v342_v11  ;;  %v522_v22 = vpack.c.bf16 %v351_v14, %v350_v12 }
 0x103   :  { %v497_v23 = vpack.c.bf16 %v341_v19, %v340_v17  ;;  %v517_v24 = vpack.c.bf16 %v349_v20, %v348_v18 }
 0x104   :  { %526 = vst [vmem:[%s758_s3 + $0x18] sm:$0xff] %v502_v21   ;;  %530 = vst [vmem:[%s758_s3 + $0x38] sm:$0xff] %v522_v22  }
 0x105   :  { %525 = vst [vmem:[%s758_s3 + $0x10] sm:$0xff] %v497_v23   ;;  %529 = vst [vmem:[%s758_s3 + $0x30] sm:$0xff] %v517_v24  }

// kernel: decoder_forward.8
= control target key start
LH: loop header
LB: loop body
LE: loop exit
PB: predicated region body
PF: predicated region fallthrough
CT: control target
= control target key end

     0   :  { %v798_v1 = vmov 0   ;;  %s1021_s1 = inlined_call_operand.vmem [shape: bf16[128,128], index: 1, kind: input, shape index: {}]   ;;  %s1022_s0 = inlined_call_operand.vmem [shape: bf16[128,128], index: 0, kind: input, shape index: {}]   ;;  %s1023_s2 = inlined_call_operand.vmem [shape: f32[128,1], index: 2, kind: input, shape index: {}]   ;;  %s1024_s3 = inlined_call_operand.vmem [shape: f32[1,128], index: 3, kind: input, shape index: {}]   ;;  %s1025_s4 = inlined_call_operand.vmem [shape: f32[128,128], index: 4, kind: output, shape index: {0}]   ;;  %s1026_s5 = inlined_call_operand.vmem [shape: bf16[128,128], index: 5, kind: output, shape index: {1}]  }
   0x1   :  { %v750_v0 = vld [vmem:[%s1021_s1] sm:$0xff]   ;;  %749 = vset.pattern.permute.xlu1 %v798_v1  ;;  %748 = vset.pattern.permute.xlu0 %v798_v1  ;;  %v751_v2 = vld [vmem:[%s1021_s1 + $0x8] sm:$0xff]   ;;  %v752_v3 = vld [vmem:[%s1021_s1 + $0x10] sm:$0xff]  }
   0x2   :  { %699 = vmatprep.subr.bf16.mxu0 %v750_v0  ;;  %731 = vmatprep.subr.bf16.mxu1 %v750_v0  ;;  %v753_v4 = vld [vmem:[%s1021_s1 + $0x18] sm:$0xff]   ;;  %v758_v5 = vld [vmem:[%s1022_s0] sm:$0xff]   ;;  %v755_v8 = vld [vmem:[%s1021_s1 + $0x28] sm:$0xff]  }
   0x3   :  { %700 = vmatpush3.bf16.msra.mxu0 %v750_v0  ;;  %739 = vmatpush3.bf16.msra.mxu1 %v750_v0  ;;  %v759_v6 = vld [vmem:[%s1022_s0 + $0x20] sm:$0xff]   ;;  %v318_v9 = vld [vmem:[%s1023_s2 + $0x10] sm:$0xff]  ;;  %v319_v11 = vld [vmem:[%s1023_s2 + $0x18] sm:$0xff] }
   0x4   :  { %701 = vmatprep.subr.bf16.mxu0 %v751_v2  ;;  %732 = vmatprep.subr.bf16.mxu1 %v751_v2  ;;  %v754_v7 = vld [vmem:[%s1021_s1 + $0x20] sm:$0xff]   ;;  %v317_v12 = vld [vmem:[%s1023_s2 + $0x8] sm:$0xff]  ;;  %v756_v13 = vld [vmem:[%s1021_s1 + $0x30] sm:$0xff]  }
   0x5   :  { %715 = vmatprep.mubr.bf16.mxu0 %v758_v5  ;;  %723 = vmatprep.mubr.bf16.mxu1 %v759_v6  ;;  %v316_v10 = vld [vmem:[%s1023_s2] sm:$0xff]  ;;  %v321_v14 = vld [vmem:[%s1023_s2 + $0x28] sm:$0xff]  ;;  %v757_v16 = vld [vmem:[%s1021_s1 + $0x38] sm:$0xff]  }
   0x6   :  { %360 = vperm.xlu1 %749, %v318_v9   ;;  %350 = vperm.xlu0 %748, %v316_v10   ;;  %v320_v15 = vld [vmem:[%s1023_s2 + $0x20] sm:$0xff]  ;;  %v323_v17 = vld [vmem:[%s1023_s2 + $0x38] sm:$0xff]  ;;  %v322_v18 = vld [vmem:[%s1023_s2 + $0x30] sm:$0xff] }
   0x7   :  { %702 = vmatpush3.bf16.msra.mxu0 %v751_v2  ;;  %740 = vmatpush3.bf16.msra.mxu1 %v751_v2  ;;  %v760_v19 = vld [vmem:[%s1022_s0 + $0x8] sm:$0xff]   ;;  %v324_v22 = vld [vmem:[%s1023_s2 + $0x40] sm:$0xff]  ;;  %v762_v23 = vld [vmem:[%s1022_s0 + $0x10] sm:$0xff]  }
   0x8   :  { %703 = vmatprep.subr.bf16.mxu0 %v752_v3  ;;  %733 = vmatprep.subr.bf16.mxu1 %v752_v3  ;;  %v761_v20 = vld [vmem:[%s1022_s0 + $0x28] sm:$0xff]   ;;  %v763_v24 = vld [vmem:[%s1022_s0 + $0x30] sm:$0xff]   ;;  %v327_v25 = vld [vmem:[%s1023_s2 + $0x58] sm:$0xff] }
   0x9   :  { %v325_v21 = vld [vmem:[%s1023_s2 + $0x48] sm:$0xff]  ;;  %v326_v26 = vld [vmem:[%s1023_s2 + $0x50] sm:$0xff]  ;;  %v764_v27 = vld [vmem:[%s1022_s0 + $0x18] sm:$0xff]  }
   0xa   :  { %365 = vperm.xlu1 %749, %v319_v11   ;;  %355 = vperm.xlu0 %748, %v317_v12   ;;  %v765_v28 = vld [vmem:[%s1022_s0 + $0x38] sm:$0xff]   ;;  %v329_v29 = vld [vmem:[%s1023_s2 + $0x68] sm:$0xff]  ;;  %v328_v30 = vld [vmem:[%s1023_s2 + $0x60] sm:$0xff] }
   0xb   :  { %704 = vmatpush3.bf16.msra.mxu0 %v752_v3  ;;  %741 = vmatpush3.bf16.msra.mxu1 %v752_v3  ;;  %v331_v31 = vld [vmem:[%s1023_s2 + $0x78] sm:$0xff]  ;;  %v330_v32 = vld [vmem:[%s1023_s2 + $0x70] sm:$0xff]  ;;  %v930_v48 = vld [vmem:[%s1024_s3] ss:$0 sm:$0xff] }
   0xc   :  { %705 = vmatprep.subr.bf16.mxu0 %v753_v4  ;;  %734 = vmatprep.subr.bf16.mxu1 %v753_v4 }
   0xe   :  { %375 = vperm.xlu1 %749, %v321_v14   ;;  %370 = vperm.xlu0 %748, %v320_v15  }
   0xf   :  { %706 = vmatpush3.bf16.msra.mxu0 %v753_v4  ;;  %742 = vmatpush3.bf16.msra.mxu1 %v753_v4 }
  0x10   :  { %707 = vmatprep.subr.bf16.mxu0 %v754_v7  ;;  %735 = vmatprep.subr.bf16.mxu1 %v754_v7 }
  0x12   :  { %385 = vperm.xlu1 %749, %v323_v17   ;;  %380 = vperm.xlu0 %748, %v322_v18  }
  0x13   :  { %708 = vmatpush3.bf16.msra.mxu0 %v754_v7  ;;  %743 = vmatpush3.bf16.msra.mxu1 %v754_v7 }
  0x14   :  { %709 = vmatprep.subr.bf16.mxu0 %v755_v8  ;;  %736 = vmatprep.subr.bf16.mxu1 %v755_v8 }
  0x16   :  { %395 = vperm.xlu1 %749, %v325_v21   ;;  %390 = vperm.xlu0 %748, %v324_v22  }
  0x17   :  { %710 = vmatpush3.bf16.msra.mxu0 %v755_v8  ;;  %744 = vmatpush3.bf16.msra.mxu1 %v755_v8 }
  0x18   :  { %711 = vmatprep.subr.bf16.mxu0 %v756_v13  ;;  %737 = vmatprep.subr.bf16.mxu1 %v756_v13 }
  0x1a   :  { %405 = vperm.xlu1 %749, %v327_v25   ;;  %400 = vperm.xlu0 %748, %v326_v26  }
  0x1b   :  { %712 = vmatpush3.bf16.msra.mxu0 %v756_v13  ;;  %745 = vmatpush3.bf16.msra.mxu1 %v756_v13 }
  0x1c   :  { %713 = vmatprep.subr.bf16.mxu0 %v757_v16  ;;  %738 = vmatprep.subr.bf16.mxu1 %v757_v16 }
  0x1e   :  { %415 = vperm.xlu1 %749, %v329_v29   ;;  %410 = vperm.xlu0 %748, %v328_v30  }
  0x1f   :  { %714 = vmatpush3.bf16.msra.mxu0 %v757_v16  ;;  %746 = vmatpush3.bf16.msra.mxu1 %v757_v16 }
  0x22   :  { %716 = vmatmul.mubr.bf16.vlgmr.msra.gmra.mrb[0].mxu0 %v760_v19  ;;  %724 = vmatmul.mubr.bf16.vlgmr.msra.gmra.mrb[0].mxu1 %v761_v20 }
  0x23   :  { %719 = vmatprep.mubr.bf16.mxu0 %v762_v23  ;;  %727 = vmatprep.mubr.bf16.mxu1 %v763_v24 }
  0x24   :  { %425 = vperm.xlu1 %749, %v331_v31   ;;  %420 = vperm.xlu0 %748, %v330_v32  }
  0x2a   :  { %720 = vmatmul.mubr.bf16.gmra.mrb[4].mxu0 %v764_v27  ;;  %728 = vmatmul.mubr.bf16.gmra.mrb[4].mxu1 %v765_v28 }
  0x85   :  { %v361_v33 = vpop.permute.xlu1 %360  ;;  %v351_v34 = vpop.permute.xlu0 %350 }
  0x89   :  { %v366_v35 = vpop.permute.xlu1 %365  ;;  %v356_v36 = vpop.permute.xlu0 %355 }
  0x8d   :  { %v925_v37 = vpop.permute.xlu1 %375  ;;  %v371_v38 = vpop.permute.xlu0 %370 }
  0x91   :  { %v386_v39 = vpop.permute.xlu1 %385  ;;  %v381_v40 = vpop.permute.xlu0 %380 }
  0x95   :  { %v396_v41 = vpop.permute.xlu1 %395  ;;  %v391_v42 = vpop.permute.xlu0 %390 }
  0x99   :  { %v406_v43 = vpop.permute.xlu1 %405  ;;  %v401_v44 = vpop.permute.xlu0 %400 }
  0x9d   :  { %v416_v45 = vpop.permute.xlu1 %415  ;;  %v411_v46 = vpop.permute.xlu0 %410 }
  0xa3   :  { %v426_v6 = vpop.permute.xlu1 %425  ;;  %v421_v7 = vpop.permute.xlu0 %420 }
  0xf5   :  { %v717_v47 = vpop.f32.mrb[0].mxu0  ;;  %v725_v49 = vpop.f32.mrb[0].mxu1 }
  0xf6   :  { %v430_v50 = vmul.f32 %v717_v47, %v361_v33  ;;  %v438_v51 = vmul.f32 %v725_v49, %v401_v44  ;;  %v218_v52 = vpop.f32.mrb[1].mxu0  ;;  %v250_v53 = vpop.f32.mrb[1].mxu1 }
  0xf7   :  { %v428_v54 = vmul.f32 %v351_v34, %v218_v52  ;;  %v436_v55 = vmul.f32 %v391_v42, %v250_v53  ;;  %v718_v56 = vpop.f32.mrb[2].mxu0  ;;  %v726_v57 = vpop.f32.mrb[2].mxu1 }
  0xf8   :  { %v453_v58 = vadd.f32 %v930_v48, %v430_v50  ;;  %v461_v59 = vadd.f32 %v930_v48, %v438_v51  ;;  %v431_v60 = vmul.f32 %v718_v56, %v366_v35  ;;  %v439_v61 = vmul.f32 %v726_v57, %v406_v43  ;;  %v221_v62 = vpop.f32.mrb[3].mxu0  ;;  %v253_v63 = vpop.f32.mrb[3].mxu1 }
  0xf9   :  { %v451_v0 = vadd.f32 %v930_v48, %v428_v54  ;;  %v459_v1 = vadd.f32 %v930_v48, %v436_v55  ;;  %v429_v2 = vmul.f32 %v356_v36, %v221_v62  ;;  %v437_v3 = vmul.f32 %v396_v41, %v253_v63 }
  0xfa   :  { %766 = vtanh.f32 %v453_v58  ;;  %v454_v4 = vadd.f32 %v930_v48, %v431_v60  ;;  %v462_v5 = vadd.f32 %v930_v48, %v439_v61 }
  0xfb   :  { %768 = vtanh.f32 %v461_v59  ;;  %v452_v8 = vadd.f32 %v930_v48, %v429_v2  ;;  %v460_v9 = vadd.f32 %v930_v48, %v437_v3 }
  0xfc   :  { %770 = vtanh.f32 %v451_v0 }
  0xfd   :  { %772 = vtanh.f32 %v459_v1  ;;  %v721_v10 = vpop.f32.mrb[4].mxu0  ;;  %v729_v11 = vpop.f32.mrb[4].mxu1 }
  0xfe   :  { %774 = vtanh.f32 %v454_v4  ;;  %v434_v12 = vmul.f32 %v721_v10, %v381_v40  ;;  %v442_v13 = vmul.f32 %v729_v11, %v421_v7  ;;  %v234_v14 = vpop.f32.mrb[5].mxu0  ;;  %v266_v15 = vpop.f32.mrb[5].mxu1 }
  0xff   :  { %776 = vtanh.f32 %v462_v5  ;;  %v432_v16 = vmul.f32 %v371_v38, %v234_v14  ;;  %v440_v17 = vmul.f32 %v411_v46, %v266_v15  ;;  %v722_v18 = vpop.f32.mrb[6].mxu0  ;;  %v730_v19 = vpop.f32.mrb[6].mxu1 }
 0x100   :  { %778 = vtanh.f32 %v452_v8  ;;  %v457_v20 = vadd.f32 %v930_v48, %v434_v12  ;;  %v465_v21 = vadd.f32 %v930_v48, %v442_v13  ;;  %v435_v22 = vmul.f32 %v722_v18, %v386_v39  ;;  %v237_v23 = vpop.f32.mrb[7].mxu0  ;;  %v269_v24 = vpop.f32.mrb[7].mxu1 }
 0x101   :  { %780 = vtanh.f32 %v460_v9  ;;  %v455_v25 = vadd.f32 %v930_v48, %v432_v16  ;;  %v463_v26 = vadd.f32 %v930_v48, %v440_v17  ;;  %v443_v27 = vmul.f32 %v730_v19, %v426_v6 }
 0x102   :  { %782 = vtanh.f32 %v457_v20  ;;  %v458_v28 = vadd.f32 %v930_v48, %v435_v22  ;;  %v433_v29 = vmul.f32 %v925_v37, %v237_v23  ;;  %v441_v30 = vmul.f32 %v416_v45, %v269_v24 }
 0x103   :  { %784 = vtanh.f32 %v465_v21  ;;  %v466_v31 = vadd.f32 %v930_v48, %v443_v27 }
 0x104   :  { %v767_v32 = vpop.eup %766  ;;  %786 = vtanh.f32 %v455_v25  ;;  %v456_v33 = vadd.f32 %v930_v48, %v433_v29  ;;  %v464_v35 = vadd.f32 %v930_v48, %v441_v30 }
 0x105   :  { %v769_v34 = vpop.eup %768  ;;  %485 = vst [vmem:[%s1025_s4 + $0x10] sm:$0xff] %v767_v32  ;;  %788 = vtanh.f32 %v463_v26 }
 0x106   :  { %v771_v36 = vpop.eup %770  ;;  %493 = vst [vmem:[%s1025_s4 + $0x50] sm:$0xff] %v769_v34  ;;  %790 = vtanh.f32 %v458_v28 }
 0x107   :  { %v773_v37 = vpop.eup %772  ;;  %483 = vst [vmem:[%s1025_s4] sm:$0xff] %v771_v36  ;;  %792 = vtanh.f32 %v466_v31 }
 0x108   :  { %v775_v38 = vpop.eup %774  ;;  %491 = vst [vmem:[%s1025_s4 + $0x40] sm:$0xff] %v773_v37  ;;  %794 = vtanh.f32 %v456_v33 }
 0x109   :  { %v777_v39 = vpop.eup %776  ;;  %486 = vst [vmem:[%s1025_s4 + $0x18] sm:$0xff] %v775_v38  ;;  %v644_v40 = vpack.c.bf16 %v775_v38, %v767_v32  ;;  %796 = vtanh.f32 %v464_v35 }
 0x10a   :  { %v779_v41 = vpop.eup %778  ;;  %494 = vst [vmem:[%s1025_s4 + $0x58] sm:$0xff] %v777_v39  ;;  %v664_v42 = vpack.c.bf16 %v777_v39, %v769_v34 }
 0x10b   :  { %v781_v43 = vpop.eup %780  ;;  %676 = vst [vmem:[%s1026_s5 + $0x8] sm:$0xff] %v644_v40   ;;  %484 = vst [vmem:[%s1025_s4 + $0x8] sm:$0xff] %v779_v41  ;;  %v639_v44 = vpack.c.bf16 %v779_v41, %v771_v36 }
 0x10c   :  { %v783_v45 = vpop.eup %782  ;;  %680 = vst [vmem:[%s1026_s5 + $0x28] sm:$0xff] %v664_v42   ;;  %492 = vst [vmem:[%s1025_s4 + $0x48] sm:$0xff] %v781_v43  ;;  %v659_v46 = vpack.c.bf16 %v781_v43, %v773_v37 }
 0x10d   :  { %v785_v47 = vpop.eup %784  ;;  %640 = vst [vmem:[%s1026_s5] sm:$0xff] %v639_v44   ;;  %489 = vst [vmem:[%s1025_s4 + $0x30] sm:$0xff] %v783_v45 }
 0x10e   :  { %v787_v48 = vpop.eup %786  ;;  %679 = vst [vmem:[%s1026_s5 + $0x20] sm:$0xff] %v659_v46   ;;  %497 = vst [vmem:[%s1025_s4 + $0x70] sm:$0xff] %v785_v47 }
 0x10f   :  { %v789_v49 = vpop.eup %788  ;;  %487 = vst [vmem:[%s1025_s4 + $0x20] sm:$0xff] %v787_v48 }
 0x110   :  { %v791_v50 = vpop.eup %790  ;;  %495 = vst [vmem:[%s1025_s4 + $0x60] sm:$0xff] %v789_v49 }
 0x111   :  { %v793_v51 = vpop.eup %792  ;;  %490 = vst [vmem:[%s1025_s4 + $0x38] sm:$0xff] %v791_v50  ;;  %v654_v52 = vpack.c.bf16 %v791_v50, %v783_v45 }
 0x112   :  { %v795_v53 = vpop.eup %794  ;;  %498 = vst [vmem:[%s1025_s4 + $0x78] sm:$0xff] %v793_v51  ;;  %v674_v54 = vpack.c.bf16 %v793_v51, %v785_v47 }
 0x113   :  { %v797_v55 = vpop.eup %796  ;;  %678 = vst [vmem:[%s1026_s5 + $0x18] sm:$0xff] %v654_v52   ;;  %488 = vst [vmem:[%s1025_s4 + $0x28] sm:$0xff] %v795_v53  ;;  %v649_v56 = vpack.c.bf16 %v795_v53, %v787_v48 }
 0x114   :  { %682 = vst [vmem:[%s1026_s5 + $0x38] sm:$0xff] %v674_v54   ;;  %496 = vst [vmem:[%s1025_s4 + $0x68] sm:$0xff] %v797_v55  ;;  %v669_v57 = vpack.c.bf16 %v797_v55, %v789_v49 }
 0x115   :  { %677 = vst [vmem:[%s1026_s5 + $0x10] sm:$0xff] %v649_v56  }
 0x116   :  { %681 = vst [vmem:[%s1026_s5 + $0x30] sm:$0xff] %v669_v57  }

// kernel: decoder_forward.11
= control target key start
LH: loop header
LB: loop body
LE: loop exit
PB: predicated region body
PF: predicated region fallthrough
CT: control target
= control target key end

     0   :  { %v779_v2 = vmov 0   ;;  %s1104_s0 = inlined_call_operand.vmem [shape: bf16[128,128], index: 0, kind: input, shape index: {}]   ;;  %s1105_s1 = inlined_call_operand.vmem [shape: bf16[128,128], index: 1, kind: input, shape index: {}]   ;;  %s1106_s2 = inlined_call_operand.vmem [shape: s32[128,1], index: 2, kind: input, shape index: {}]   ;;  %s1107_s3 = inlined_call_operand.vmem [shape: s32[1,128], index: 3, kind: input, shape index: {}]   ;;  %s1108_s4 = inlined_call_operand.hbm [shape: f32[128,128], index: 4, kind: output, shape index: {}]  }
   0x1   :  { %v21_v0 = vld [vmem:[%s1106_s2 + $0x10] sm:$0xff]  ;;  %v19_v1 = vld [vmem:[%s1106_s2] sm:$0xff]  ;;  %674 = vset.pattern.permute.xlu1 %v779_v2  ;;  %673 = vset.pattern.permute.xlu0 %v779_v2  ;;  %v22_v3 = vld [vmem:[%s1106_s2 + $0x18] sm:$0xff] }
   0x2   :  { %43 = vperm.xlu1 %674, %v21_v0   ;;  %37 = vperm.xlu0 %673, %v19_v1   ;;  %v20_v4 = vld [vmem:[%s1106_s2 + $0x8] sm:$0xff] }
   0x3   :  { %9 = vsyncpa [#allocation3], 0  ;;  %v24_v5 = vld [vmem:[%s1106_s2 + $0x28] sm:$0xff]  ;;  %v23_v6 = vld [vmem:[%s1106_s2 + $0x20] sm:$0xff] }
   0x4   :  { %v26_v7 = vld [vmem:[%s1106_s2 + $0x38] sm:$0xff]  ;;  %v25_v8 = vld [vmem:[%s1106_s2 + $0x30] sm:$0xff]  ;;  %v28_v9 = vld [vmem:[%s1106_s2 + $0x48] sm:$0xff] }
   0x5   :  { %v27_v10 = vld [vmem:[%s1106_s2 + $0x40] sm:$0xff]  ;;  %v30_v11 = vld [vmem:[%s1106_s2 + $0x58] sm:$0xff]  ;;  %v29_v12 = vld [vmem:[%s1106_s2 + $0x50] sm:$0xff] }
   0x6   :  { %46 = vperm.xlu1 %674, %v22_v3   ;;  %40 = vperm.xlu0 %673, %v20_v4   ;;  %v32_v13 = vld [vmem:[%s1106_s2 + $0x68] sm:$0xff]  ;;  %v31_v14 = vld [vmem:[%s1106_s2 + $0x60] sm:$0xff]  ;;  %v34_v15 = vld [vmem:[%s1106_s2 + $0x78] sm:$0xff] }
   0x7   :  { %v33_v16 = vld [vmem:[%s1106_s2 + $0x70] sm:$0xff]  ;;  %v874_v23 = vld [vmem:[%s1107_s3] ss:$0 sm:$0xff] }
   0xa   :  { %52 = vperm.xlu1 %674, %v24_v5   ;;  %49 = vperm.xlu0 %673, %v23_v6  }
   0xe   :  { %58 = vperm.xlu1 %674, %v26_v7   ;;  %55 = vperm.xlu0 %673, %v25_v8  }
  0x12   :  { %64 = vperm.xlu1 %674, %v28_v9   ;;  %61 = vperm.xlu0 %673, %v27_v10  }
  0x16   :  { %70 = vperm.xlu1 %674, %v30_v11   ;;  %67 = vperm.xlu0 %673, %v29_v12  }
  0x1a   :  { %76 = vperm.xlu1 %674, %v32_v13   ;;  %73 = vperm.xlu0 %673, %v31_v14  }
  0x1e   :  { %82 = vperm.xlu1 %674, %v34_v15   ;;  %79 = vperm.xlu0 %673, %v33_v16  }
  0x81   :  { %v859_v17 = vpop.permute.xlu1 %43  ;;  %v861_v18 = vpop.permute.xlu0 %37 }
  0x82   :  { %vm88_vm2 = vcmp.eq.s32.totalorder %v861_v18, %v874_v23  ;;  %vm90_vm8 = vcmp.eq.s32.totalorder %v859_v17, %v874_v23 }
  0x83   :  { %v104_v30 = vsel %vm88_vm2, 1, %v779_v2  ;;  %v106_v38 = vsel %vm90_vm8, 1, %v779_v2 }
  0x85   :  { %v863_v19 = vpop.permute.xlu1 %46  ;;  %v865_v20 = vpop.permute.xlu0 %40 }
  0x86   :  { %vm89_vm3 = vcmp.eq.s32.totalorder %v865_v20, %v874_v23  ;;  %vm91_vm9 = vcmp.eq.s32.totalorder %v863_v19, %v874_v23 }
  0x87   :  { %v105_v31 = vsel %vm89_vm3, 1, %v779_v2  ;;  %v107_v39 = vsel %vm91_vm9, 1, %v779_v2 }
  0x89   :  { %v867_v21 = vpop.permute.xlu1 %52  ;;  %v869_v22 = vpop.permute.xlu0 %49 }
  0x8a   :  { %vm1109_vm0 = vcmp.eq.s32.totalorder %v867_v21, %v874_v23  ;;  %vm1111_vm1 = vcmp.eq.s32.totalorder %v869_v22, %v874_v23 }
  0x8b   :  { %v109_v26 = vsel %vm1109_vm0, 1, %v779_v2  ;;  %v108_v27 = vsel %vm1111_vm1, 1, %v779_v2 }
  0x8c   :  { %vm122_vm10 = vcmp.gt.s32.totalorder %v105_v31, %v109_v26  ;;  %vm120_vm11 = vcmp.gt.s32.totalorder %v104_v30, %v108_v27 }
  0x8d   :  { %v876_v24 = vpop.permute.xlu1 %58  ;;  %v878_v25 = vpop.permute.xlu0 %55  ;;  %v123_v40 = vsel %vm122_vm10, %v105_v31, %v109_v26  ;;  %v121_v41 = vsel %vm120_vm11, %v104_v30, %v108_v27 }
  0x8e   :  { %vm1110_vm4 = vcmp.eq.s32.totalorder %v876_v24, %v874_v23  ;;  %vm1112_vm5 = vcmp.eq.s32.totalorder %v878_v25, %v874_v23 }
  0x8f   :  { %v111_v32 = vsel %vm1110_vm4, 1, %v779_v2  ;;  %v110_v33 = vsel %vm1112_vm5, 1, %v779_v2 }
  0x90   :  { %vm126_vm14 = vcmp.gt.s32.totalorder %v107_v39, %v111_v32  ;;  %vm124_vm15 = vcmp.gt.s32.totalorder %v106_v38, %v110_v33 }
  0x91   :  { %v900_v28 = vpop.permute.xlu1 %64  ;;  %v902_v29 = vpop.permute.xlu0 %61  ;;  %v127_v46 = vsel %vm126_vm14, %v107_v39, %v111_v32  ;;  %v125_v47 = vsel %vm124_vm15, %v106_v38, %v110_v33 }
  0x92   :  { %vm97_vm6 = vcmp.eq.s32.totalorder %v900_v28, %v874_v23  ;;  %vm96_vm7 = vcmp.eq.s32.totalorder %v902_v29, %v874_v23 }
  0x93   :  { %v113_v34 = vsel %vm97_vm6, 1, %v779_v2  ;;  %v112_v35 = vsel %vm96_vm7, 1, %v779_v2 }
  0x94   :  { %vm130_vm0 = vcmp.gt.s32.totalorder %v123_v40, %v113_v34  ;;  %vm128_vm4 = vcmp.gt.s32.totalorder %v121_v41, %v112_v35 }
  0x95   :  { %v936_v36 = vpop.permute.xlu1 %70  ;;  %v938_v37 = vpop.permute.xlu0 %67  ;;  %v131_v49 = vsel %vm130_vm0, %v123_v40, %v113_v34  ;;  %v129_v50 = vsel %vm128_vm4, %v121_v41, %v112_v35 }
  0x96   :  { %vm99_vm12 = vcmp.eq.s32.totalorder %v936_v36, %v874_v23  ;;  %vm98_vm13 = vcmp.eq.s32.totalorder %v938_v37, %v874_v23 }
  0x97   :  { %v115_v42 = vsel %vm99_vm12, 1, %v779_v2  ;;  %v114_v43 = vsel %vm98_vm13, 1, %v779_v2 }
  0x98   :  { %vm134_vm14 = vcmp.gt.s32.totalorder %v127_v46, %v115_v42  ;;  %vm132_vm15 = vcmp.gt.s32.totalorder %v125_v47, %v114_v43 }
  0x99   :  { %v960_v44 = vpop.permute.xlu1 %76  ;;  %v962_v45 = vpop.permute.xlu0 %73  ;;  %v135_v56 = vsel %vm134_vm14, %v127_v46, %v115_v42  ;;  %v133_v58 = vsel %vm132_vm15, %v125_v47, %v114_v43 }
  0x9a   :  { %vm1113_vm10 = vcmp.eq.s32.totalorder %v960_v44, %v874_v23  ;;  %vm1114_vm11 = vcmp.eq.s32.totalorder %v962_v45, %v874_v23 }
  0x9b   :  { %v117_v48 = vsel %vm1113_vm10, 1, %v779_v2  ;;  %v116_v51 = vsel %vm1114_vm11, 1, %v779_v2 }
  0x9c   :  { %vm138_vm1 = vcmp.gt.s32.totalorder %v131_v49, %v117_v48  ;;  %vm136_vm5 = vcmp.gt.s32.totalorder %v129_v50, %v116_v51 }
  0x9d   :  { %v139_v52 = vsel %vm138_vm1, %v131_v49, %v117_v48  ;;  %v137_v53 = vsel %vm136_vm5, %v129_v50, %v116_v51  ;;  %v976_v54 = vpop.permute.xlu1 %82  ;;  %v978_v55 = vpop.permute.xlu0 %79 }
  0x9e   :  { %vm103_vm10 = vcmp.eq.s32.totalorder %v976_v54, %v874_v23  ;;  %vm102_vm0 = vcmp.eq.s32.totalorder %v978_v55, %v874_v23  ;;  %vm144_vm1 = vcmp.gt.s32.totalorder %v137_v53, %v139_v52 }
  0x9f   :  { %v119_v57 = vsel %vm103_vm10, 1, %v779_v2  ;;  %v118_v59 = vsel %vm102_vm0, 1, %v779_v2  ;;  %v145_v62 = vsel %vm144_vm1, %v137_v53, %v139_v52 }
  0xa0   :  { %vm142_vm4 = vcmp.gt.s32.totalorder %v135_v56, %v119_v57  ;;  %vm140_vm5 = vcmp.gt.s32.totalorder %v133_v58, %v118_v59 }
  0xa1   :  { %v143_v60 = vsel %vm142_vm4, %v135_v56, %v119_v57  ;;  %v141_v61 = vsel %vm140_vm5, %v133_v58, %v118_v59 }
  0xa2   :  { %vm146_vm11 = vcmp.gt.s32.totalorder %v141_v61, %v143_v60 }
  0xa3   :  { %v147_v63 = vsel %vm146_vm11, %v141_v61, %v143_v60 }
  0xa4   :  { %vm148_vm14 = vcmp.gt.s32.totalorder %v145_v62, %v147_v63 }
  0xa5   :  { %v149_v0 = vsel %vm148_vm14, %v145_v62, %v147_v63 }
  0xa6   :  { %v151_v1 = vshra.s32 %v149_v0, 16  ;;  %v150_v4 = vand.u32 65535, %v149_v0 }
  0xa8   :  { %v153_v3 = vcvt.s32.f32 %v151_v1  ;;  %v152_v6 = vcvt.s32.f32 %v150_v4 }
  0xaa   :  { %154 = vmax.xlane.f32.xlu0 %v153_v3 }
 0x137   :  { %v155_v5 = vpop.xlane.xlu0 %154 }
 0x138   :  { %vm156_vm15 = vcmp.eq.f32.partialorder %v153_v3, %v155_v5  ;;  %v161_v2 = vcvt.f32.s32 %v155_v5 }
 0x139   :  { %v157_v7 = vsel %vm156_vm15, %v152_v6, -inf }
 0x13a   :  { %158 = vmax.xlane.f32.xlu1 %v157_v7  ;;  %v162_v9 = vshll.u32 %v161_v2, 16 }
 0x1c7   :  { %v159_v8 = vpop.xlane.xlu1 %158 }
 0x1c8   :  { %v160_v10 = vcvt.f32.s32 %v159_v8 }
 0x1ca   :  { %v163_v11 = vadd.s32 %v162_v9, %v160_v10 }
 0x1cc   :  { %v164_v12 = vrot.slane %v163_v11, 4 }
 0x1ce   :  { %vm165_vm4 = vcmp.gt.s32.totalorder %v163_v11, %v164_v12 }
 0x1cf   :  { %v166_v13 = vsel %vm165_vm4, %v163_v11, %v164_v12 }
 0x1d0   :  { %v167_v14 = vrot.slane %v166_v13, 2 }
 0x1d2   :  { %vm168_vm11 = vcmp.gt.s32.totalorder %v166_v13, %v167_v14 }
 0x1d3   :  { %v169_v15 = vsel %vm168_vm11, %v166_v13, %v167_v14 }
 0x1d4   :  { %v170_v16 = vrot.slane %v169_v15, 1 }
 0x1d6   :  { %vm171_vm1 = vcmp.gt.s32.totalorder %v169_v15, %v170_v16 }
 0x1d7   :  { %v172_v26 = vsel %vm171_vm1, %v169_v15, %v170_v16 }
 0x1d8   :  { %666 = vpush %v172_v26 }
 0x209   :  { %s992_s2 = spop %666 }
 0x20a   :  { %p568_p0 = scmp.ne.s32.totalorder %s992_s2, 1 }
 0x20b   :  { %v675_v27 = vld [vmem:[%s1105_s1] sm:$0xff] (!%p568_p0)   ;;  %v676_v30 = vld [vmem:[%s1105_s1 + $0x8] sm:$0xff] (!%p568_p0)   ;;  %v677_v31 = vld [vmem:[%s1105_s1 + $0x10] sm:$0xff] (!%p568_p0)  }
 0x20c   :  { %177 = sbr.rel (%p568_p0) target bundleno = 824 (0x338), region = 21  ;;  %618 = vmatprep.subr.bf16.mxu0 (!%p568_p0), %v675_v27  ;;  %650 = vmatprep.subr.bf16.mxu1 (!%p568_p0), %v675_v27  ;;  %v678_v32 = vld [vmem:[%s1105_s1 + $0x18] sm:$0xff] (!%p568_p0)   ;;  %v683_v33 = vld [vmem:[%s1104_s0] sm:$0xff] (!%p568_p0)   ;;  %v680_v38 = vld [vmem:[%s1105_s1 + $0x28] sm:$0xff] (!%p568_p0)  }
 0x20d   :  { %619 = vmatpush3.bf16.msra.mxu0 (!%p568_p0), %v675_v27  ;;  %658 = vmatpush3.bf16.msra.mxu1 (!%p568_p0), %v675_v27  ;;  %v684_v34 = vld [vmem:[%s1104_s0 + $0x20] sm:$0xff] (!%p568_p0)   ;;  %v681_v39 = vld [vmem:[%s1105_s1 + $0x30] sm:$0xff] (!%p568_p0)   ;;  %v682_v40 = vld [vmem:[%s1105_s1 + $0x38] sm:$0xff] (!%p568_p0)  }
 0x20e   :  { %620 = vmatprep.subr.bf16.mxu0 (!%p568_p0), %v676_v30  ;;  %651 = vmatprep.subr.bf16.mxu1 (!%p568_p0), %v676_v30  ;;  %v679_v35 = vld [vmem:[%s1105_s1 + $0x20] sm:$0xff] (!%p568_p0)   ;;  %v685_v41 = vld [vmem:[%s1104_s0 + $0x8] sm:$0xff] (!%p568_p0)   ;;  %v687_v43 = vld [vmem:[%s1104_s0 + $0x10] sm:$0xff] (!%p568_p0)  }
 0x20f   :  { %634 = vmatprep.mubr.bf16.mxu0 (!%p568_p0), %v683_v33  ;;  %642 = vmatprep.mubr.bf16.mxu1 (!%p568_p0), %v684_v34  ;;  %v686_v42 = vld [vmem:[%s1104_s0 + $0x28] sm:$0xff] (!%p568_p0)   ;;  %v688_v46 = vld [vmem:[%s1104_s0 + $0x30] sm:$0xff] (!%p568_p0)   ;;  %v689_v47 = vld [vmem:[%s1104_s0 + $0x18] sm:$0xff] (!%p568_p0)  }
 0x210   :  { %v690_v48 = vld [vmem:[%s1104_s0 + $0x38] sm:$0xff] (!%p568_p0)  }
 0x211   :  { %621 = vmatpush3.bf16.msra.mxu0 (!%p568_p0), %v676_v30  ;;  %659 = vmatpush3.bf16.msra.mxu1 (!%p568_p0), %v676_v30 }
 0x212   :  { %622 = vmatprep.subr.bf16.mxu0 (!%p568_p0), %v677_v31  ;;  %652 = vmatprep.subr.bf16.mxu1 (!%p568_p0), %v677_v31 }
 0x215   :  { %623 = vmatpush3.bf16.msra.mxu0 %v677_v31  ;;  %660 = vmatpush3.bf16.msra.mxu1 %v677_v31 }
 0x216   :  { %624 = vmatprep.subr.bf16.mxu0 %v678_v32  ;;  %653 = vmatprep.subr.bf16.mxu1 %v678_v32 }
 0x219   :  { %625 = vmatpush3.bf16.msra.mxu0 %v678_v32  ;;  %661 = vmatpush3.bf16.msra.mxu1 %v678_v32 }
 0x21a   :  { %626 = vmatprep.subr.bf16.mxu0 %v679_v35  ;;  %654 = vmatprep.subr.bf16.mxu1 %v679_v35 }
 0x21d   :  { %627 = vmatpush3.bf16.msra.mxu0 %v679_v35  ;;  %662 = vmatpush3.bf16.msra.mxu1 %v679_v35 }
 0x21e   :  { %628 = vmatprep.subr.bf16.mxu0 %v680_v38  ;;  %655 = vmatprep.subr.bf16.mxu1 %v680_v38 }
 0x221   :  { %629 = vmatpush3.bf16.msra.mxu0 %v680_v38  ;;  %663 = vmatpush3.bf16.msra.mxu1 %v680_v38 }
 0x222   :  { %630 = vmatprep.subr.bf16.mxu0 %v681_v39  ;;  %656 = vmatprep.subr.bf16.mxu1 %v681_v39 }
 0x225   :  { %631 = vmatpush3.bf16.msra.mxu0 %v681_v39  ;;  %664 = vmatpush3.bf16.msra.mxu1 %v681_v39 }
 0x226   :  { %632 = vmatprep.subr.bf16.mxu0 %v682_v40  ;;  %657 = vmatprep.subr.bf16.mxu1 %v682_v40 }
 0x229   :  { %633 = vmatpush3.bf16.msra.mxu0 %v682_v40  ;;  %665 = vmatpush3.bf16.msra.mxu1 %v682_v40 }
 0x22c   :  { %635 = vmatmul.mubr.bf16.vlgmr.msra.gmra.mrb[0].mxu0 %v685_v41  ;;  %643 = vmatmul.mubr.bf16.vlgmr.msra.gmra.mrb[0].mxu1 %v686_v42 }
 0x22d   :  { %638 = vmatprep.mubr.bf16.mxu0 %v687_v43  ;;  %646 = vmatprep.mubr.bf16.mxu1 %v688_v46 }
 0x234   :  { %639 = vmatmul.mubr.bf16.gmra.mrb[4].mxu0 %v689_v47  ;;  %647 = vmatmul.mubr.bf16.gmra.mrb[4].mxu1 %v690_v48 }
 0x2ff   :  { %v636_v49 = vpop.f32.mrb[0].mxu0  ;;  %v644_v50 = vpop.f32.mrb[0].mxu1 }
 0x300   :  { %v587_v51 = vmul.f32 -1.442695, %v636_v49  ;;  %v595_v52 = vmul.f32 -1.442695, %v644_v50  ;;  %v340_v53 = vpop.f32.mrb[1].mxu0  ;;  %v372_v56 = vpop.f32.mrb[1].mxu1 }
 0x301   :  { %v585_v57 = vmul.f32 -1.442695, %v340_v53  ;;  %v593_v58 = vmul.f32 -1.442695, %v372_v56  ;;  %v637_v59 = vpop.f32.mrb[2].mxu0  ;;  %v645_v60 = vpop.f32.mrb[2].mxu1 }
 0x302   :  { %691 = vpow2.f32 %v587_v51  ;;  %v588_v61 = vmul.f32 -1.442695, %v637_v59  ;;  %v343_v62 = vpop.f32.mrb[3].mxu0  ;;  %v375_v63 = vpop.f32.mrb[3].mxu1  ;;  %v596_v0 = vmul.f32 -1.442695, %v645_v60 }
 0x303   :  { %693 = vpow2.f32 %v595_v52  ;;  %v586_v1 = vmul.f32 -1.442695, %v343_v62  ;;  %v594_v3 = vmul.f32 -1.442695, %v375_v63 }
 0x304   :  { %695 = vpow2.f32 %v585_v57 }
 0x305   :  { %697 = vpow2.f32 %v593_v58 }
 0x306   :  { %699 = vpow2.f32 %v588_v61 }
 0x307   :  { %701 = vpow2.f32 %v596_v0  ;;  %v640_v4 = vpop.f32.mrb[4].mxu0  ;;  %v648_v5 = vpop.f32.mrb[4].mxu1 }
 0x308   :  { %703 = vpow2.f32 %v586_v1  ;;  %v591_v6 = vmul.f32 -1.442695, %v640_v4  ;;  %v599_v7 = vmul.f32 -1.442695, %v648_v5  ;;  %v356_v2 = vpop.f32.mrb[5].mxu0  ;;  %v388_v8 = vpop.f32.mrb[5].mxu1 }
 0x309   :  { %705 = vpow2.f32 %v594_v3  ;;  %v589_v9 = vmul.f32 -1.442695, %v356_v2  ;;  %v597_v10 = vmul.f32 -1.442695, %v388_v8  ;;  %v641_v11 = vpop.f32.mrb[6].mxu0  ;;  %v649_v12 = vpop.f32.mrb[6].mxu1 }
 0x30a   :  { %707 = vpow2.f32 %v591_v6  ;;  %v592_v13 = vmul.f32 -1.442695, %v641_v11  ;;  %v359_v14 = vpop.f32.mrb[7].mxu0  ;;  %v391_v15 = vpop.f32.mrb[7].mxu1  ;;  %v600_v58 = vmul.f32 -1.442695, %v649_v12 }
 0x30b   :  { %709 = vpow2.f32 %v599_v7  ;;  %v590_v61 = vmul.f32 -1.442695, %v359_v14  ;;  %v598_v0 = vmul.f32 -1.442695, %v391_v15 }
 0x30c   :  { %v692_v16 = vpop.eup %691  ;;  %711 = vpow2.f32 %v589_v9 }
 0x30d   :  { %v694_v26 = vpop.eup %693  ;;  %v453_v27 = vadd.f32 1.0, %v692_v16  ;;  %713 = vpow2.f32 %v597_v10 }
 0x30e   :  { %v696_v30 = vpop.eup %695  ;;  %v461_v31 = vadd.f32 1.0, %v694_v26  ;;  %715 = vpow2.f32 %v592_v13 }
 0x30f   :  { %v698_v32 = vpop.eup %697  ;;  %717 = vrcp.f32 %v453_v27  ;;  %v451_v33 = vadd.f32 1.0, %v696_v30 }
 0x310   :  { %v700_v34 = vpop.eup %699  ;;  %719 = vrcp.f32 %v461_v31  ;;  %v459_v35 = vadd.f32 1.0, %v698_v32 }
 0x311   :  { %v702_v38 = vpop.eup %701  ;;  %721 = vrcp.f32 %v451_v33  ;;  %v454_v39 = vadd.f32 1.0, %v700_v34 }
 0x312   :  { %v704_v40 = vpop.eup %703  ;;  %723 = vrcp.f32 %v459_v35  ;;  %v462_v41 = vadd.f32 1.0, %v702_v38 }
 0x313   :  { %v706_v42 = vpop.eup %705  ;;  %725 = vrcp.f32 %v454_v39  ;;  %v452_v43 = vadd.f32 1.0, %v704_v40 }
 0x314   :  { %v708_v46 = vpop.eup %707  ;;  %727 = vrcp.f32 %v462_v41  ;;  %v460_v47 = vadd.f32 1.0, %v706_v42 }
 0x315   :  { %v710_v48 = vpop.eup %709  ;;  %729 = vrcp.f32 %v452_v43  ;;  %v457_v49 = vadd.f32 1.0, %v708_v46 }
 0x316   :  { %v712_v50 = vpop.eup %711  ;;  %731 = vrcp.f32 %v460_v47  ;;  %v465_v51 = vadd.f32 1.0, %v710_v48 }
 0x317   :  { %v714_v52 = vpop.eup %713  ;;  %733 = vrcp.f32 %v457_v49  ;;  %v455_v53 = vadd.f32 1.0, %v712_v50 }
 0x318   :  { %v716_v56 = vpop.eup %715  ;;  %735 = vrcp.f32 %v465_v51  ;;  %v463_v57 = vadd.f32 1.0, %v714_v52 }
 0x319   :  { %v718_v59 = vpop.eup %717  ;;  %737 = vrcp.f32 %v455_v53  ;;  %v458_v60 = vadd.f32 1.0, %v716_v56 }
 0x31a   :  { %v720_v62 = vpop.eup %719  ;;  %v501_v63 = vsel %vm90_vm8, %v718_v59, 0.0  ;;  %739 = vrcp.f32 %v463_v57  ;;  %vm1119_vm8 = vcmp.eq.s32.totalorder %v867_v21, %v874_v23 }
 0x31b   :  { %v722_v1 = vpop.eup %721  ;;  %517 = vst [vmem:[#allocation2 + $0x10] sm:$0xff] %v501_v63  ;;  %v509_v3 = vsel %vm98_vm13, %v720_v62, 0.0  ;;  %741 = vrcp.f32 %v458_v60 }
 0x31c   :  { %v724_v4 = vpop.eup %723  ;;  %525 = vst [vmem:[#allocation2 + $0x50] sm:$0xff] %v509_v3  ;;  %v499_v5 = vsel %vm88_vm2, %v722_v1, 0.0  ;;  %743 = vpow2.f32 %v600_v58  ;;  %vm1115_vm2 = vcmp.eq.s32.totalorder %v878_v25, %v874_v23 }
 0x31d   :  { %v726_v6 = vpop.eup %725  ;;  %515 = vst [vmem:[#allocation2] sm:$0xff] %v499_v5  ;;  %v507_v17 = vsel %vm96_vm7, %v724_v4, 0.0  ;;  %745 = vpow2.f32 %v590_v61  ;;  %vm1118_vm7 = vcmp.eq.s32.totalorder %v876_v24, %v874_v23 }
 0x31e   :  { %v728_v7 = vpop.eup %727  ;;  %523 = vst [vmem:[#allocation2 + $0x40] sm:$0xff] %v507_v17  ;;  %v502_v37 = vsel %vm91_vm9, %v726_v6, 0.0  ;;  %747 = vpow2.f32 %v598_v0  ;;  %vm1120_vm9 = vcmp.eq.s32.totalorder %v960_v44, %v874_v23 }
 0x31f   :  { %v730_v2 = vpop.eup %729  ;;  %518 = vst [vmem:[#allocation2 + $0x18] sm:$0xff] %v502_v37  ;;  %v510_v18 = vsel %vm99_vm12, %v728_v7, 0.0 }
 0x320   :  { %v732_v8 = vpop.eup %731  ;;  %526 = vst [vmem:[#allocation2 + $0x58] sm:$0xff] %v510_v18  ;;  %v500_v29 = vsel %vm89_vm3, %v730_v2, 0.0  ;;  %vm1116_vm3 = vcmp.eq.s32.totalorder %v869_v22, %v874_v23 }
 0x321   :  { %v734_v9 = vpop.eup %733  ;;  %516 = vst [vmem:[#allocation2 + $0x8] sm:$0xff] %v500_v29  ;;  %v508_v19 = vsel %vm97_vm6, %v732_v8, 0.0  ;;  %vm1117_vm6 = vcmp.eq.s32.totalorder %v962_v45, %v874_v23 }
 0x322   :  { %v736_v10 = vpop.eup %735  ;;  %524 = vst [vmem:[#allocation2 + $0x48] sm:$0xff] %v508_v19  ;;  %v505_v11 = vsel %vm1115_vm2, %v734_v9, 0.0 }
 0x323   :  { %v738_v36 = vpop.eup %737  ;;  %521 = vst [vmem:[#allocation2 + $0x30] sm:$0xff] %v505_v11  ;;  %v513_v12 = vsel %vm102_vm0, %v736_v10, 0.0 }
 0x324   :  { %v740_v20 = vpop.eup %739  ;;  %529 = vst [vmem:[#allocation2 + $0x70] sm:$0xff] %v513_v12  ;;  %v503_v13 = vsel %vm1116_vm3, %v738_v36, 0.0 }
 0x325   :  { %v742_v28 = vpop.eup %741  ;;  %519 = vst [vmem:[#allocation2 + $0x20] sm:$0xff] %v503_v13  ;;  %v511_v14 = vsel %vm1117_vm6, %v740_v20, 0.0 }
 0x326   :  { %v744_v25 = vpop.eup %743  ;;  %527 = vst [vmem:[#allocation2 + $0x60] sm:$0xff] %v511_v14  ;;  %v506_v15 = vsel %vm1118_vm7, %v742_v28, 0.0 }
 0x327   :  { %v746_v55 = vpop.eup %745  ;;  %522 = vst [vmem:[#allocation2 + $0x38] sm:$0xff] %v506_v15  ;;  %v466_v16 = vadd.f32 1.0, %v744_v25 }
 0x328   :  { %v748_v26 = vpop.eup %747  ;;  %v456_v27 = vadd.f32 1.0, %v746_v55 }
 0x329   :  { %749 = vrcp.f32 %v466_v16  ;;  %v464_v22 = vadd.f32 1.0, %v748_v26 }
 0x32a   :  { %751 = vrcp.f32 %v456_v27 }
 0x32b   :  { %753 = vrcp.f32 %v464_v22 }
 0x333   :  { %v750_v30 = vpop.eup %749 }
 0x334   :  { %v752_v31 = vpop.eup %751  ;;  %v514_v45 = vsel %vm103_vm10, %v750_v30, 0.0 }
 0x335   :  { %v754_v32 = vpop.eup %753  ;;  %530 = vst [vmem:[#allocation2 + $0x78] sm:$0xff] %v514_v45  ;;  %v504_v24 = vsel %vm1119_vm8, %v752_v31, 0.0 }
 0x336   :  { %520 = vst [vmem:[#allocation2 + $0x28] sm:$0xff] %v504_v24  ;;  %v512_v33 = vsel %vm1120_vm9, %v754_v32, 0.0 }
 0x337   :  { %528 = vst [vmem:[#allocation2 + $0x68] sm:$0xff] %v512_v33 }
 0x338 PF:  { %p601_p1 = scmp.ne.s32.totalorder %s992_s2, 0 }
 0x339   :  { %v780_v34 = vmov (!%p601_p1), 0.0  }
 0x33a   :  { %534 = sbr.rel (%p601_p1) target bundleno = 834 (0x342), region = 25  ;;  %535 = vst [vmem:[#allocation2] sm:$0xff] (!%p601_p1), %v780_v34  ;;  %536 = vst [vmem:[#allocation2 + $0x8] sm:$0xff] (!%p601_p1), %v780_v34 }
 0x33b   :  { %537 = vst [vmem:[#allocation2 + $0x10] sm:$0xff] (!%p601_p1), %v780_v34  ;;  %538 = vst [vmem:[#allocation2 + $0x18] sm:$0xff] (!%p601_p1), %v780_v34 }
 0x33c   :  { %539 = vst [vmem:[#allocation2 + $0x20] sm:$0xff] (!%p601_p1), %v780_v34  ;;  %540 = vst [vmem:[#allocation2 + $0x28] sm:$0xff] (!%p601_p1), %v780_v34 }
 0x33d   :  { %541 = vst [vmem:[#allocation2 + $0x30] sm:$0xff] (!%p601_p1), %v780_v34  ;;  %542 = vst [vmem:[#allocation2 + $0x38] sm:$0xff] (!%p601_p1), %v780_v34 }
 0x33e   :  { %543 = vst [vmem:[#allocation2 + $0x40] sm:$0xff] (!%p601_p1), %v780_v34  ;;  %544 = vst [vmem:[#allocation2 + $0x48] sm:$0xff] (!%p601_p1), %v780_v34 }
 0x33f   :  { %545 = vst [vmem:[#allocation2 + $0x50] sm:$0xff] (!%p601_p1), %v780_v34  ;;  %546 = vst [vmem:[#allocation2 + $0x58] sm:$0xff] (!%p601_p1), %v780_v34 }
 0x340   :  { %547 = vst [vmem:[#allocation2 + $0x60] sm:$0xff] (!%p601_p1), %v780_v34  ;;  %548 = vst [vmem:[#allocation2 + $0x68] sm:$0xff] (!%p601_p1), %v780_v34 }
 0x341   :  { %549 = vst [vmem:[#allocation2 + $0x70] sm:$0xff] %v780_v34  ;;  %550 = vst [vmem:[#allocation2 + $0x78] sm:$0xff] %v780_v34 }
 0x342 PF:  { %s781_s0 = smov [#allocation2]  }
 0x343   :  { %s556_s2 = sshll.u32 %s781_s0, 4  ;;  %s557_s2 = int_to_ptr.vmem [resolvable:$true] %s556_s2 }
 0x344   :  { %s755_s26 = scalar_lea.vmem %s557_s2, 2048  ;;  %p760_p3 = scmp.lt.s32.totalorder %s557_s2, %s557_s2 }
 0x345   :  { %p756_p2 = scmp.ne.s32.totalorder %s557_s2, %s755_s26  ;;  %p761_p4 = scmp.lt.s32.totalorder %s755_s26, %s755_s26 }
 0x347   :  { %p762_p5 = por %p761_p4, %p760_p3 }
 0x349   :  { %p763_p6 = pnand %p762_p5, %p756_p2 }
 0x34b   :  { %766 = shalt.err (!%p763_p6)
}
 0x34c   :  { %s767_s29 = scalar_lea.hbm %s1108_s4, 2048 }
 0x34d   :  { %p768_p7 = scmp.ne.s32.totalorder %s1108_s4, %s767_s29  ;;  %p771_p8 = scmp.lt.u32.totalorder %s767_s29, %s1108_s4 }
 0x34f   :  { %p773_p9 = pnand %p771_p8, %p768_p7 }
 0x351   :  { %776 = shalt.err (!%p773_p9)
}
 0x352   :  { %s782_s8 = smov 128   ;;  %s783_s9 = smov 8  }
 0x353   :  { %562 = dma.vmem_to_hbm [thread:$0]  %s557_s2, 2048, %s1108_s4, [#allocation3], %s782_s8, %s782_s8, %s783_s9  }
 0x354   :  { %777 = dma.done.wait [#allocation3], 2048  }
 0x355   :  { %778 = vsyncadd [#allocation3], 4294965248 }
 0x356   :  { %566 = vsyncpa [#allocation3], 1 }

</bundles_post_ra>
